<compile_context>
chip_gen: v6e
topology: v6e:2x2x1
jax: 0.10.0
libtpu: 0.0.40
codegen_flags: <defaults>
</compile_context>

<pallas_src>
import jax
import jax.numpy as jnp
from jax import lax
from jax.experimental import pallas as pl
from jax.experimental.pallas import tpu as pltpu

START_IDX = 3   # tag_to_ix['<START>']
STOP_IDX = 4    # tag_to_ix['<STOP>']
OUT_W = 128     # packed output row width (lane-dense)


# ----------------------------------------------------------------------------
# Fused kernel: embedding gather + BiLSTM + hidden2tag + Viterbi + backtracking
# ----------------------------------------------------------------------------
def bilstm_crf_kernel(ids_ref,                         # (T, 1)   int32 sentence
                      emb_ref,                         # (Vp, E)  embedding table
                      wih_ref,                         # (E, 8H)  fused input proj
                      whh_ref,                         # (2H, 8H) block-diag recurrent
                      b_ref,                           # (1, 8H)  fused gate bias
                      h0_ref, c0_ref,                  # (1, 2H)  [fwd | bwd]
                      wtag_f_ref, wtag_b_ref,          # (H, K)
                      btag_ref,                        # (1, K)
                      trans_t_ref,                     # (K, K) transitions.T [prev,next]
                      stop_col_ref,                    # (K, 1) transitions[STOP, :]
                      out_ref,                         # (1, OUT_W) int32, packed result
                      h_scr):                          # scratch (T, 2H) f32
    T = ids_ref.shape[0]
    Vp = emb_ref.shape[0]
    H2 = h_scr.shape[1]                                # 2H
    H = H2 // 2
    G8 = whh_ref.shape[1]                              # 8H
    K = trans_t_ref.shape[0]
    assert G8 == 4 * H2
    assert T + 2 <= out_ref.shape[1]

    # ---- embedding gather (one-hot matmul) + fused input projection ---------
    ids = ids_ref[...]                                                     # (T,1) i32
    onehot = (ids == lax.broadcasted_iota(jnp.int32, (T, Vp), 1)).astype(jnp.float32)
    embeds = jnp.dot(onehot, emb_ref[...], preferred_element_type=jnp.float32)
    x_all = jnp.dot(embeds, wih_ref[...],
                    preferred_element_type=jnp.float32) + b_ref[...]       # (T, 8H)

    whh = whh_ref[...]                                 # (2H,8H) = 4 vregs, cheap to hoist
    lane = lax.broadcasted_iota(jnp.int32, (1, G8), 1)
    fwd_lane = (lane % H2) < H     # within each 2H gate block: first H lanes = fwd dir

    # ---- merged fwd+bwd recurrence: ONE matmul per step, fully unrolled ------
    h = h0_ref[...]                                                        # (1, 2H)
    c = c0_ref[...]
    for s in range(T):
        tb = T - 1 - s
        # forward direction consumes x[s]; backward direction consumes x[T-1-s]
        x_row = jnp.where(fwd_lane, x_all[s:s + 1, :], x_all[tb:tb + 1, :])
        gates = x_row + jnp.dot(h, whh, preferred_element_type=jnp.float32)  # (1, 8H)
        i = jax.nn.sigmoid(gates[:, 0 * H2:1 * H2])
        f = jax.nn.sigmoid(gates[:, 1 * H2:2 * H2])
        g = jnp.tanh(gates[:, 2 * H2:3 * H2])
        o = jax.nn.sigmoid(gates[:, 3 * H2:4 * H2])
        c = f * c + i * g
        h = o * jnp.tanh(c)
        h_scr[s:s + 1, :] = h          # row s = [h_fwd(s) | h_bwd(T-1-s)]

    # ---- hidden2tag ----------------------------------------------------------
    m_all = h_scr[...]                                                     # (T, 2H)
    feat_f = (jnp.dot(m_all[:, :H], wtag_f_ref[...],
                      preferred_element_type=jnp.float32) + btag_ref[...])  # (T,K) time order
    feat_b = jnp.dot(m_all[:, H:], wtag_b_ref[...],
                     preferred_element_type=jnp.float32)   # (T,K) REVERSED time order
    # feats[t] = feat_f[t] + feat_b[T-1-t]

    # ---- Viterbi DP (fully unrolled; backpointer rows stay in vregs) ---------
    trans_t = trans_t_ref[...]
    rr = lax.broadcasted_iota(jnp.int32, (K, K), 0)        # prev index
    cc = lax.broadcasted_iota(jnp.int32, (K, K), 1)        # next index
    col_idx = lax.broadcasted_iota(jnp.int32, (K, 1), 0)
    eye = rr == cc
    fv = jnp.where(col_idx == START_IDX, 0.0, -10000.0)    # (K,1) init viterbi vars

    bptr_rows = []
    for t in range(T):
        m = fv + trans_t                                   # (K,K) [prev, next]
        vmax = jnp.max(m, axis=0, keepdims=True)           # (1,K) best per next tag
        # first-occurrence argmax over prev (matches torch.max index choice)
        bp = jnp.min(jnp.where(m == vmax, rr, K), axis=0, keepdims=True)
        bptr_rows.append(bp)                               # (1,K) int32
        new_row = vmax + feat_f[t:t + 1, :] + feat_b[T - 1 - t:T - t, :]
        # (1,K) -> (K,1) relayout via diagonal select + lane reduce (K tiny, safe)
        fv = jnp.sum(jnp.where(eye, jnp.broadcast_to(new_row, (K, K)), 0.0),
                     axis=1, keepdims=True)

    terminal = fv + stop_col_ref[...]                      # (K,1)
    tmax = jnp.max(terminal, axis=0, keepdims=True)        # (1,1) path score
    best = jnp.min(jnp.where(terminal == tmax, col_idx, K),
                   axis=0, keepdims=True)                  # (1,1) int32 best tag

    # ---- integer backtracking + single packed, lane-dense output store -------
    lane_k = lax.broadcasted_iota(jnp.int32, (1, K), 1)
    lane_o = lax.broadcasted_iota(jnp.int32, (1, out_ref.shape[1]), 1)

    def gather_lane(bp_row, idx):
        # bp_row[0, idx] as a (1,1) int32 (integer one-hot select + lane reduce)
        return jnp.max(jnp.where(lane_k == idx, bp_row, 0), axis=1, keepdims=True)

    packed = jnp.zeros((1, out_ref.shape[1]), jnp.int32)
    cur = best
    packed = jnp.where(lane_o == T - 1, cur, packed)
    for t in range(T - 1, 0, -1):
        cur = gather_lane(bptr_rows[t], cur)
        packed = jnp.where(lane_o == t - 1, cur, packed)
    start = gather_lane(bptr_rows[0], cur)                 # must equal START tag
    packed = jnp.where(lane_o == T, start, packed)
    packed = jnp.where(lane_o == T + 1, pltpu.bitcast(tmax, jnp.int32), packed)
    out_ref[...] = packed


# ----------------------------------------------------------------------------
# Wrapper
# ----------------------------------------------------------------------------
@jax.jit
def bilstm_crf_forward(sentence, params):
    T = sentence.shape[0]
    H2 = params["h0"].shape[1]
    ids = sentence.reshape(T, 1).astype(jnp.int32)

    vmem = pl.BlockSpec(memory_space=pltpu.MemorySpace.VMEM)
    packed = pl.pallas_call(
        bilstm_crf_kernel,
        out_shape=jax.ShapeDtypeStruct((1, OUT_W), jnp.int32),
        in_specs=[vmem] * 12,
        out_specs=vmem,
        scratch_shapes=[pltpu.VMEM((T, H2), jnp.float32)],
    )(ids, params["emb"], params["wih"], params["whh"], params["b"],
      params["h0"], params["c0"],
      params["wtag_f"], params["wtag_b"], params["btag"],
      params["trans_t"], params["stop_col"])

    path = packed[0, :T]
    start = packed[0, T]
    score = jax.lax.bitcast_convert_type(packed[0, T + 1], jnp.float32)
    return score, path, start


# ----------------------------------------------------------------------------
# Deterministic parameter initialization + packing (shapes per the torch module)
# ----------------------------------------------------------------------------
def init_params(key, vocab_size, embedding_dim, hidden_dim, tagset_size):
    H = hidden_dim // 2
    H2 = 2 * H
    keys = jax.random.split(key, 14)

    def unif(k, shape, bound):
        return jax.random.uniform(k, shape, jnp.float32, -bound, bound)

    emb = jax.random.normal(keys[0], (vocab_size, embedding_dim), jnp.float32)

    bnd = 1.0 / float(H) ** 0.5
    w_ih_f = unif(keys[1], (4 * H, embedding_dim), bnd)
    w_hh_f = unif(keys[2], (4 * H, H), bnd)
    b_ih_f = unif(keys[3], (4 * H,), bnd)
    b_hh_f = unif(keys[4], (4 * H,), bnd)
    w_ih_b = unif(keys[5], (4 * H, embedding_dim), bnd)
    w_hh_b = unif(keys[6], (4 * H, H), bnd)
    b_ih_b = unif(keys[7], (4 * H,), bnd)
    b_hh_b = unif(keys[8], (4 * H,), bnd)

    bnd2 = 1.0 / float(hidden_dim) ** 0.5
    w_tag = unif(keys[9], (tagset_size, hidden_dim), bnd2)
    b_tag = unif(keys[10], (tagset_size,), bnd2)

    transitions = jax.random.normal(keys[11], (tagset_size, tagset_size), jnp.float32)
    transitions = transitions.at[START_IDX, :].set(-10000.0)
    transitions = transitions.at[:, STOP_IDX].set(-10000.0)

    h0 = jax.random.normal(keys[12], (2, H), jnp.float32)   # init_hidden() h: [fwd, bwd]
    c0 = jax.random.normal(keys[13], (2, H), jnp.float32)   # init_hidden() c

    # ---- packing for the fused kernel layout --------------------------------
    # Gate layout (lane order) per gate g in (i, f, g, o):
    #   lanes [g*2H, g*2H+H)  -> forward direction
    #   lanes [g*2H+H, (g+1)*2H) -> backward direction
    v_pad = -(-vocab_size // 8) * 8
    emb_pad = jnp.zeros((v_pad, embedding_dim), jnp.float32).at[:vocab_size].set(emb)

    def pack_ih(wf, wb):                     # 2 x (4H,E) -> (E, 8H)
        out = jnp.zeros((embedding_dim, 4 * H2), jnp.float32)
        for g in range(4):
            out = out.at[:, g * H2:g * H2 + H].set(wf[g * H:(g + 1) * H, :].T)
            out = out.at[:, g * H2 + H:(g + 1) * H2].set(wb[g * H:(g + 1) * H, :].T)
        return out

    def pack_hh(wf, wb):                     # block-diagonal: 2 x (4H,H) -> (2H, 8H)
        out = jnp.zeros((H2, 4 * H2), jnp.float32)
        for g in range(4):
            out = out.at[:H, g * H2:g * H2 + H].set(wf[g * H:(g + 1) * H, :].T)
            out = out.at[H:, g * H2 + H:(g + 1) * H2].set(wb[g * H:(g + 1) * H, :].T)
        return out

    def pack_bias(bf, bb):                   # 2 x (4H,) -> (1, 8H)
        out = jnp.zeros((1, 4 * H2), jnp.float32)
        for g in range(4):
            out = out.at[0, g * H2:g * H2 + H].set(bf[g * H:(g + 1) * H])
            out = out.at[0, g * H2 + H:(g + 1) * H2].set(bb[g * H:(g + 1) * H])
        return out

    return dict(
        emb=emb_pad,
        wih=pack_ih(w_ih_f, w_ih_b),
        whh=pack_hh(w_hh_f, w_hh_b),
        b=pack_bias(b_ih_f + b_hh_f, b_ih_b + b_hh_b),
        h0=jnp.concatenate([h0[0:1], h0[1:2]], axis=1),     # (1, 2H) [fwd | bwd]
        c0=jnp.concatenate([c0[0:1], c0[1:2]], axis=1),
        wtag_f=w_tag[:, :H].T, wtag_b=w_tag[:, H:].T,
        btag=b_tag.reshape(1, tagset_size),
        trans_t=transitions.T,
        stop_col=transitions[STOP_IDX][:, None],
    )


if __name__ == "__main__":
    vocab_size, embedding_dim, hidden_dim, tagset_size = 20, 16, 32, 5
    T = 8

    key = jax.random.PRNGKey(0)
    k_params, k_sent = jax.random.split(key)
    params = init_params(k_params, vocab_size, embedding_dim, hidden_dim, tagset_size)
    sentence = jax.random.randint(k_sent, (T,), 0, vocab_size, dtype=jnp.int32)

    score, tag_seq, start = bilstm_crf_forward(sentence, params)
    jax.block_until_ready((score, tag_seq, start))
    assert int(start) == START_IDX  # mirrors the torch assert in _viterbi_decode
    print("KERNEL_OK")
</pallas_src>

<mosaic_0001>
module attributes {stable_mosaic.version = 11 : i64} {
  func.func @bilstm_crf_kernel(%arg0: memref<8x1xi32, #tpu.memory_space<vmem>>, %arg1: memref<24x16xf32, #tpu.memory_space<vmem>>, %arg2: memref<16x128xf32, #tpu.memory_space<vmem>>, %arg3: memref<32x128xf32, #tpu.memory_space<vmem>>, %arg4: memref<1x128xf32, #tpu.memory_space<vmem>>, %arg5: memref<1x32xf32, #tpu.memory_space<vmem>>, %arg6: memref<1x32xf32, #tpu.memory_space<vmem>>, %arg7: memref<16x5xf32, #tpu.memory_space<vmem>>, %arg8: memref<16x5xf32, #tpu.memory_space<vmem>>, %arg9: memref<1x5xf32, #tpu.memory_space<vmem>>, %arg10: memref<5x5xf32, #tpu.memory_space<vmem>>, %arg11: memref<5x1xf32, #tpu.memory_space<vmem>>, %arg12: memref<1x128xi32, #tpu.memory_space<vmem>>, %arg13: memref<8x32xf32, #tpu.memory_space<vmem>>) attributes {dimension_semantics = [], scalar_prefetch = 0 : i64, scratch_operands = 1 : i64, tpu.core_type = #tpu.core_type<tc>} {
    %c0 = arith.constant 0 : index
    %c0_0 = arith.constant 0 : index
    %0 = vector.load %arg0[%c0, %c0_0] : memref<8x1xi32, #tpu.memory_space<vmem>>, vector<8x1xi32>
    %1 = tpu.iota {dimensions = array<i32: 1>} : vector<8x24xi32>
    %2 = vector.broadcast %0 : vector<8x1xi32> to vector<8x24xi32>
    %3 = arith.cmpi eq, %2, %1 : vector<8x24xi32>
    %4 = arith.extui %3 : vector<8x24xi1> to vector<8x24xi32>
    %5 = arith.sitofp %4 : vector<8x24xi32> to vector<8x24xf32>
    %c0_1 = arith.constant 0 : index
    %c0_2 = arith.constant 0 : index
    %6 = vector.load %arg1[%c0_1, %c0_2] : memref<24x16xf32, #tpu.memory_space<vmem>>, vector<24x16xf32>
    %cst = arith.constant dense<0.000000e+00> : vector<8x16xf32>
    %7 = tpu.matmul %5, %6, %cst {dimension_numbers = #tpu.dot_dimension_numbers<[1], [0], [0], [1], [0, 0, 1, 1], [], []>} : vector<8x24xf32>, vector<24x16xf32>, vector<8x16xf32> -> vector<8x16xf32>
    %c0_3 = arith.constant 0 : index
    %c0_4 = arith.constant 0 : index
    %8 = vector.load %arg2[%c0_3, %c0_4] : memref<16x128xf32, #tpu.memory_space<vmem>>, vector<16x128xf32>
    %cst_5 = arith.constant dense<0.000000e+00> : vector<8x128xf32>
    %9 = tpu.matmul %7, %8, %cst_5 {dimension_numbers = #tpu.dot_dimension_numbers<[1], [0], [0], [1], [0, 0, 1, 1], [], []>} : vector<8x16xf32>, vector<16x128xf32>, vector<8x128xf32> -> vector<8x128xf32>
    %c0_6 = arith.constant 0 : index
    %c0_7 = arith.constant 0 : index
    %10 = vector.load %arg4[%c0_6, %c0_7] : memref<1x128xf32, #tpu.memory_space<vmem>>, vector<1x128xf32>
    %11 = vector.broadcast %10 : vector<1x128xf32> to vector<8x128xf32>
    %12 = arith.addf %9, %11 : vector<8x128xf32>
    %c0_8 = arith.constant 0 : index
    %c0_9 = arith.constant 0 : index
    %13 = vector.load %arg3[%c0_8, %c0_9] : memref<32x128xf32, #tpu.memory_space<vmem>>, vector<32x128xf32>
    %14 = tpu.iota {dimensions = array<i32: 1>} : vector<1x128xi32>
    %c32_i32 = arith.constant 32 : i32
    %c0_i32 = arith.constant 0 : i32
    %15 = arith.cmpi eq, %c32_i32, %c0_i32 : i32
    %c1_i32 = arith.constant 1 : i32
    %16 = arith.select %15, %c1_i32, %c32_i32 : i32
    %17 = vector.broadcast %16 : i32 to vector<1x128xi32>
    %18 = arith.remsi %14, %17 : vector<1x128xi32>
    %c0_i32_10 = arith.constant 0 : i32
    %19 = vector.broadcast %c0_i32_10 : i32 to vector<1x128xi32>
    %20 = arith.cmpi ne, %18, %19 : vector<1x128xi32>
    %c0_i32_11 = arith.constant 0 : i32
    %21 = vector.broadcast %c0_i32_11 : i32 to vector<1x128xi32>
    %22 = arith.cmpi slt, %18, %21 : vector<1x128xi32>
    %c0_i32_12 = arith.constant 0 : i32
    %23 = arith.cmpi slt, %16, %c0_i32_12 : i32
    %24 = vector.broadcast %23 : i1 to vector<1x128xi1>
    %25 = vector.broadcast %24 : vector<1x128xi1> to vector<1x128xi1>
    %26 = arith.xori %22, %25 : vector<1x128xi1>
    %27 = arith.andi %26, %20 : vector<1x128xi1>
    %28 = vector.broadcast %16 : i32 to vector<1x128xi32>
    %29 = arith.addi %18, %28 : vector<1x128xi32>
    %30 = arith.select %27, %29, %18 : vector<1x128xi1>, vector<1x128xi32>
    %c16_i32 = arith.constant 16 : i32
    %31 = vector.broadcast %c16_i32 : i32 to vector<1x128xi32>
    %32 = arith.cmpi slt, %30, %31 : vector<1x128xi32>
    %c0_13 = arith.constant 0 : index
    %c0_14 = arith.constant 0 : index
    %33 = vector.load %arg5[%c0_13, %c0_14] : memref<1x32xf32, #tpu.memory_space<vmem>>, vector<1x32xf32>
    %c0_15 = arith.constant 0 : index
    %c0_16 = arith.constant 0 : index
    %34 = vector.load %arg6[%c0_15, %c0_16] : memref<1x32xf32, #tpu.memory_space<vmem>>, vector<1x32xf32>
    %35 = vector.extract_strided_slice %12 {offsets = [0, 0], sizes = [1, 128], strides = [1, 1]} : vector<8x128xf32> to vector<1x128xf32>
    %36 = vector.extract_strided_slice %12 {offsets = [7, 0], sizes = [1, 128], strides = [1, 1]} : vector<8x128xf32> to vector<1x128xf32>
    %37 = arith.select %32, %35, %36 : vector<1x128xi1>, vector<1x128xf32>
    %cst_17 = arith.constant dense<0.000000e+00> : vector<1x128xf32>
    %38 = tpu.matmul %33, %13, %cst_17 {dimension_numbers = #tpu.dot_dimension_numbers<[1], [0], [0], [1], [0, 0, 1, 1], [], []>} : vector<1x32xf32>, vector<32x128xf32>, vector<1x128xf32> -> vector<1x128xf32>
    %39 = arith.addf %37, %38 : vector<1x128xf32>
    %40 = vector.extract_strided_slice %39 {offsets = [0, 0], sizes = [1, 32], strides = [1, 1]} : vector<1x128xf32> to vector<1x32xf32>
    %41 = arith.negf %40 : vector<1x32xf32>
    %42 = math.exp %41 : vector<1x32xf32>
    %cst_18 = arith.constant 1.000000e+00 : f32
    %43 = vector.broadcast %cst_18 : f32 to vector<1x32xf32>
    %44 = arith.addf %43, %42 : vector<1x32xf32>
    %45 = arith.divf %43, %44 : vector<1x32xf32>
    %46 = vector.extract_strided_slice %39 {offsets = [0, 32], sizes = [1, 32], strides = [1, 1]} : vector<1x128xf32> to vector<1x32xf32>
    %47 = arith.negf %46 : vector<1x32xf32>
    %48 = math.exp %47 : vector<1x32xf32>
    %cst_19 = arith.constant 1.000000e+00 : f32
    %49 = vector.broadcast %cst_19 : f32 to vector<1x32xf32>
    %50 = arith.addf %49, %48 : vector<1x32xf32>
    %51 = arith.divf %49, %50 : vector<1x32xf32>
    %52 = vector.extract_strided_slice %39 {offsets = [0, 64], sizes = [1, 32], strides = [1, 1]} : vector<1x128xf32> to vector<1x32xf32>
    %53 = math.tanh %52 : vector<1x32xf32>
    %54 = vector.extract_strided_slice %39 {offsets = [0, 96], sizes = [1, 32], strides = [1, 1]} : vector<1x128xf32> to vector<1x32xf32>
    %55 = arith.negf %54 : vector<1x32xf32>
    %56 = math.exp %55 : vector<1x32xf32>
    %cst_20 = arith.constant 1.000000e+00 : f32
    %57 = vector.broadcast %cst_20 : f32 to vector<1x32xf32>
    %58 = arith.addf %57, %56 : vector<1x32xf32>
    %59 = arith.divf %57, %58 : vector<1x32xf32>
    %60 = arith.mulf %51, %34 : vector<1x32xf32>
    %61 = arith.mulf %45, %53 : vector<1x32xf32>
    %62 = arith.addf %60, %61 : vector<1x32xf32>
    %63 = math.tanh %62 : vector<1x32xf32>
    %64 = arith.mulf %59, %63 : vector<1x32xf32>
    %c0_21 = arith.constant 0 : index
    %c0_22 = arith.constant 0 : index
    %65 = vector.load %arg13[%c0_21, %c0_22] : memref<8x32xf32, #tpu.memory_space<vmem>>, vector<1x32xf32>
    tpu.vector_store %arg13[%c0_21, %c0_22], %64 {strides = array<i32>} : memref<8x32xf32, #tpu.memory_space<vmem>>, vector<1x32xf32>,
    %66 = vector.extract_strided_slice %12 {offsets = [1, 0], sizes = [1, 128], strides = [1, 1]} : vector<8x128xf32> to vector<1x128xf32>
    %67 = vector.extract_strided_slice %12 {offsets = [6, 0], sizes = [1, 128], strides = [1, 1]} : vector<8x128xf32> to vector<1x128xf32>
    %68 = arith.select %32, %66, %67 : vector<1x128xi1>, vector<1x128xf32>
    %cst_23 = arith.constant dense<0.000000e+00> : vector<1x128xf32>
    %69 = tpu.matmul %64, %13, %cst_23 {dimension_numbers = #tpu.dot_dimension_numbers<[1], [0], [0], [1], [0, 0, 1, 1], [], []>} : vector<1x32xf32>, vector<32x128xf32>, vector<1x128xf32> -> vector<1x128xf32>
    %70 = arith.addf %68, %69 : vector<1x128xf32>
    %71 = vector.extract_strided_slice %70 {offsets = [0, 0], sizes = [1, 32], strides = [1, 1]} : vector<1x128xf32> to vector<1x32xf32>
    %72 = arith.negf %71 : vector<1x32xf32>
    %73 = math.exp %72 : vector<1x32xf32>
    %cst_24 = arith.constant 1.000000e+00 : f32
    %74 = vector.broadcast %cst_24 : f32 to vector<1x32xf32>
    %75 = arith.addf %74, %73 : vector<1x32xf32>
    %76 = arith.divf %74, %75 : vector<1x32xf32>
    %77 = vector.extract_strided_slice %70 {offsets = [0, 32], sizes = [1, 32], strides = [1, 1]} : vector<1x128xf32> to vector<1x32xf32>
    %78 = arith.negf %77 : vector<1x32xf32>
    %79 = math.exp %78 : vector<1x32xf32>
    %cst_25 = arith.constant 1.000000e+00 : f32
    %80 = vector.broadcast %cst_25 : f32 to vector<1x32xf32>
    %81 = arith.addf %80, %79 : vector<1x32xf32>
    %82 = arith.divf %80, %81 : vector<1x32xf32>
    %83 = vector.extract_strided_slice %70 {offsets = [0, 64], sizes = [1, 32], strides = [1, 1]} : vector<1x128xf32> to vector<1x32xf32>
    %84 = math.tanh %83 : vector<1x32xf32>
    %85 = vector.extract_strided_slice %70 {offsets = [0, 96], sizes = [1, 32], strides = [1, 1]} : vector<1x128xf32> to vector<1x32xf32>
    %86 = arith.negf %85 : vector<1x32xf32>
    %87 = math.exp %86 : vector<1x32xf32>
    %cst_26 = arith.constant 1.000000e+00 : f32
    %88 = vector.broadcast %cst_26 : f32 to vector<1x32xf32>
    %89 = arith.addf %88, %87 : vector<1x32xf32>
    %90 = arith.divf %88, %89 : vector<1x32xf32>
    %91 = arith.mulf %82, %62 : vector<1x32xf32>
    %92 = arith.mulf %76, %84 : vector<1x32xf32>
    %93 = arith.addf %91, %92 : vector<1x32xf32>
    %94 = math.tanh %93 : vector<1x32xf32>
    %95 = arith.mulf %90, %94 : vector<1x32xf32>
    %c1 = arith.constant 1 : index
    %c0_27 = arith.constant 0 : index
    %96 = vector.load %arg13[%c1, %c0_27] : memref<8x32xf32, #tpu.memory_space<vmem>>, vector<1x32xf32>
    tpu.vector_store %arg13[%c1, %c0_27], %95 {strides = array<i32>} : memref<8x32xf32, #tpu.memory_space<vmem>>, vector<1x32xf32>,
    %97 = vector.extract_strided_slice %12 {offsets = [2, 0], sizes = [1, 128], strides = [1, 1]} : vector<8x128xf32> to vector<1x128xf32>
    %98 = vector.extract_strided_slice %12 {offsets = [5, 0], sizes = [1, 128], strides = [1, 1]} : vector<8x128xf32> to vector<1x128xf32>
    %99 = arith.select %32, %97, %98 : vector<1x128xi1>, vector<1x128xf32>
    %cst_28 = arith.constant dense<0.000000e+00> : vector<1x128xf32>
    %100 = tpu.matmul %95, %13, %cst_28 {dimension_numbers = #tpu.dot_dimension_numbers<[1], [0], [0], [1], [0, 0, 1, 1], [], []>} : vector<1x32xf32>, vector<32x128xf32>, vector<1x128xf32> -> vector<1x128xf32>
    %101 = arith.addf %99, %100 : vector<1x128xf32>
    %102 = vector.extract_strided_slice %101 {offsets = [0, 0], sizes = [1, 32], strides = [1, 1]} : vector<1x128xf32> to vector<1x32xf32>
    %103 = arith.negf %102 : vector<1x32xf32>
    %104 = math.exp %103 : vector<1x32xf32>
    %cst_29 = arith.constant 1.000000e+00 : f32
    %105 = vector.broadcast %cst_29 : f32 to vector<1x32xf32>
    %106 = arith.addf %105, %104 : vector<1x32xf32>
    %107 = arith.divf %105, %106 : vector<1x32xf32>
    %108 = vector.extract_strided_slice %101 {offsets = [0, 32], sizes = [1, 32], strides = [1, 1]} : vector<1x128xf32> to vector<1x32xf32>
    %109 = arith.negf %108 : vector<1x32xf32>
    %110 = math.exp %109 : vector<1x32xf32>
    %cst_30 = arith.constant 1.000000e+00 : f32
    %111 = vector.broadcast %cst_30 : f32 to vector<1x32xf32>
    %112 = arith.addf %111, %110 : vector<1x32xf32>
    %113 = arith.divf %111, %112 : vector<1x32xf32>
    %114 = vector.extract_strided_slice %101 {offsets = [0, 64], sizes = [1, 32], strides = [1, 1]} : vector<1x128xf32> to vector<1x32xf32>
    %115 = math.tanh %114 : vector<1x32xf32>
    %116 = vector.extract_strided_slice %101 {offsets = [0, 96], sizes = [1, 32], strides = [1, 1]} : vector<1x128xf32> to vector<1x32xf32>
    %117 = arith.negf %116 : vector<1x32xf32>
    %118 = math.exp %117 : vector<1x32xf32>
    %cst_31 = arith.constant 1.000000e+00 : f32
    %119 = vector.broadcast %cst_31 : f32 to vector<1x32xf32>
    %120 = arith.addf %119, %118 : vector<1x32xf32>
    %121 = arith.divf %119, %120 : vector<1x32xf32>
    %122 = arith.mulf %113, %93 : vector<1x32xf32>
    %123 = arith.mulf %107, %115 : vector<1x32xf32>
    %124 = arith.addf %122, %123 : vector<1x32xf32>
    %125 = math.tanh %124 : vector<1x32xf32>
    %126 = arith.mulf %121, %125 : vector<1x32xf32>
    %c2 = arith.constant 2 : index
    %c0_32 = arith.constant 0 : index
    %127 = vector.load %arg13[%c2, %c0_32] : memref<8x32xf32, #tpu.memory_space<vmem>>, vector<1x32xf32>
    tpu.vector_store %arg13[%c2, %c0_32], %126 {strides = array<i32>} : memref<8x32xf32, #tpu.memory_space<vmem>>, vector<1x32xf32>,
    %128 = vector.extract_strided_slice %12 {offsets = [3, 0], sizes = [1, 128], strides = [1, 1]} : vector<8x128xf32> to vector<1x128xf32>
    %129 = vector.extract_strided_slice %12 {offsets = [4, 0], sizes = [1, 128], strides = [1, 1]} : vector<8x128xf32> to vector<1x128xf32>
    %130 = arith.select %32, %128, %129 : vector<1x128xi1>, vector<1x128xf32>
    %cst_33 = arith.constant dense<0.000000e+00> : vector<1x128xf32>
    %131 = tpu.matmul %126, %13, %cst_33 {dimension_numbers = #tpu.dot_dimension_numbers<[1], [0], [0], [1], [0, 0, 1, 1], [], []>} : vector<1x32xf32>, vector<32x128xf32>, vector<1x128xf32> -> vector<1x128xf32>
    %132 = arith.addf %130, %131 : vector<1x128xf32>
    %133 = vector.extract_strided_slice %132 {offsets = [0, 0], sizes = [1, 32], strides = [1, 1]} : vector<1x128xf32> to vector<1x32xf32>
    %134 = arith.negf %133 : vector<1x32xf32>
    %135 = math.exp %134 : vector<1x32xf32>
    %cst_34 = arith.constant 1.000000e+00 : f32
    %136 = vector.broadcast %cst_34 : f32 to vector<1x32xf32>
    %137 = arith.addf %136, %135 : vector<1x32xf32>
    %138 = arith.divf %136, %137 : vector<1x32xf32>
    %139 = vector.extract_strided_slice %132 {offsets = [0, 32], sizes = [1, 32], strides = [1, 1]} : vector<1x128xf32> to vector<1x32xf32>
    %140 = arith.negf %139 : vector<1x32xf32>
    %141 = math.exp %140 : vector<1x32xf32>
    %cst_35 = arith.constant 1.000000e+00 : f32
    %142 = vector.broadcast %cst_35 : f32 to vector<1x32xf32>
    %143 = arith.addf %142, %141 : vector<1x32xf32>
    %144 = arith.divf %142, %143 : vector<1x32xf32>
    %145 = vector.extract_strided_slice %132 {offsets = [0, 64], sizes = [1, 32], strides = [1, 1]} : vector<1x128xf32> to vector<1x32xf32>
    %146 = math.tanh %145 : vector<1x32xf32>
    %147 = vector.extract_strided_slice %132 {offsets = [0, 96], sizes = [1, 32], strides = [1, 1]} : vector<1x128xf32> to vector<1x32xf32>
    %148 = arith.negf %147 : vector<1x32xf32>
    %149 = math.exp %148 : vector<1x32xf32>
    %cst_36 = arith.constant 1.000000e+00 : f32
    %150 = vector.broadcast %cst_36 : f32 to vector<1x32xf32>
    %151 = arith.addf %150, %149 : vector<1x32xf32>
    %152 = arith.divf %150, %151 : vector<1x32xf32>
    %153 = arith.mulf %144, %124 : vector<1x32xf32>
    %154 = arith.mulf %138, %146 : vector<1x32xf32>
    %155 = arith.addf %153, %154 : vector<1x32xf32>
    %156 = math.tanh %155 : vector<1x32xf32>
    %157 = arith.mulf %152, %156 : vector<1x32xf32>
    %c3 = arith.constant 3 : index
    %c0_37 = arith.constant 0 : index
    %158 = vector.load %arg13[%c3, %c0_37] : memref<8x32xf32, #tpu.memory_space<vmem>>, vector<1x32xf32>
    tpu.vector_store %arg13[%c3, %c0_37], %157 {strides = array<i32>} : memref<8x32xf32, #tpu.memory_space<vmem>>, vector<1x32xf32>,
    %159 = vector.extract_strided_slice %12 {offsets = [4, 0], sizes = [1, 128], strides = [1, 1]} : vector<8x128xf32> to vector<1x128xf32>
    %160 = vector.extract_strided_slice %12 {offsets = [3, 0], sizes = [1, 128], strides = [1, 1]} : vector<8x128xf32> to vector<1x128xf32>
    %161 = arith.select %32, %159, %160 : vector<1x128xi1>, vector<1x128xf32>
    %cst_38 = arith.constant dense<0.000000e+00> : vector<1x128xf32>
    %162 = tpu.matmul %157, %13, %cst_38 {dimension_numbers = #tpu.dot_dimension_numbers<[1], [0], [0], [1], [0, 0, 1, 1], [], []>} : vector<1x32xf32>, vector<32x128xf32>, vector<1x128xf32> -> vector<1x128xf32>
    %163 = arith.addf %161, %162 : vector<1x128xf32>
    %164 = vector.extract_strided_slice %163 {offsets = [0, 0], sizes = [1, 32], strides = [1, 1]} : vector<1x128xf32> to vector<1x32xf32>
    %165 = arith.negf %164 : vector<1x32xf32>
    %166 = math.exp %165 : vector<1x32xf32>
    %cst_39 = arith.constant 1.000000e+00 : f32
    %167 = vector.broadcast %cst_39 : f32 to vector<1x32xf32>
    %168 = arith.addf %167, %166 : vector<1x32xf32>
    %169 = arith.divf %167, %168 : vector<1x32xf32>
    %170 = vector.extract_strided_slice %163 {offsets = [0, 32], sizes = [1, 32], strides = [1, 1]} : vector<1x128xf32> to vector<1x32xf32>
    %171 = arith.negf %170 : vector<1x32xf32>
    %172 = math.exp %171 : vector<1x32xf32>
    %cst_40 = arith.constant 1.000000e+00 : f32
    %173 = vector.broadcast %cst_40 : f32 to vector<1x32xf32>
    %174 = arith.addf %173, %172 : vector<1x32xf32>
    %175 = arith.divf %173, %174 : vector<1x32xf32>
    %176 = vector.extract_strided_slice %163 {offsets = [0, 64], sizes = [1, 32], strides = [1, 1]} : vector<1x128xf32> to vector<1x32xf32>
    %177 = math.tanh %176 : vector<1x32xf32>
    %178 = vector.extract_strided_slice %163 {offsets = [0, 96], sizes = [1, 32], strides = [1, 1]} : vector<1x128xf32> to vector<1x32xf32>
    %179 = arith.negf %178 : vector<1x32xf32>
    %180 = math.exp %179 : vector<1x32xf32>
    %cst_41 = arith.constant 1.000000e+00 : f32
    %181 = vector.broadcast %cst_41 : f32 to vector<1x32xf32>
    %182 = arith.addf %181, %180 : vector<1x32xf32>
    %183 = arith.divf %181, %182 : vector<1x32xf32>
    %184 = arith.mulf %175, %155 : vector<1x32xf32>
    %185 = arith.mulf %169, %177 : vector<1x32xf32>
    %186 = arith.addf %184, %185 : vector<1x32xf32>
    %187 = math.tanh %186 : vector<1x32xf32>
    %188 = arith.mulf %183, %187 : vector<1x32xf32>
    %c4 = arith.constant 4 : index
    %c0_42 = arith.constant 0 : index
    %189 = vector.load %arg13[%c4, %c0_42] : memref<8x32xf32, #tpu.memory_space<vmem>>, vector<1x32xf32>
    tpu.vector_store %arg13[%c4, %c0_42], %188 {strides = array<i32>} : memref<8x32xf32, #tpu.memory_space<vmem>>, vector<1x32xf32>,
    %190 = vector.extract_strided_slice %12 {offsets = [5, 0], sizes = [1, 128], strides = [1, 1]} : vector<8x128xf32> to vector<1x128xf32>
    %191 = vector.extract_strided_slice %12 {offsets = [2, 0], sizes = [1, 128], strides = [1, 1]} : vector<8x128xf32> to vector<1x128xf32>
    %192 = arith.select %32, %190, %191 : vector<1x128xi1>, vector<1x128xf32>
    %cst_43 = arith.constant dense<0.000000e+00> : vector<1x128xf32>
    %193 = tpu.matmul %188, %13, %cst_43 {dimension_numbers = #tpu.dot_dimension_numbers<[1], [0], [0], [1], [0, 0, 1, 1], [], []>} : vector<1x32xf32>, vector<32x128xf32>, vector<1x128xf32> -> vector<1x128xf32>
    %194 = arith.addf %192, %193 : vector<1x128xf32>
    %195 = vector.extract_strided_slice %194 {offsets = [0, 0], sizes = [1, 32], strides = [1, 1]} : vector<1x128xf32> to vector<1x32xf32>
    %196 = arith.negf %195 : vector<1x32xf32>
    %197 = math.exp %196 : vector<1x32xf32>
    %cst_44 = arith.constant 1.000000e+00 : f32
    %198 = vector.broadcast %cst_44 : f32 to vector<1x32xf32>
    %199 = arith.addf %198, %197 : vector<1x32xf32>
    %200 = arith.divf %198, %199 : vector<1x32xf32>
    %201 = vector.extract_strided_slice %194 {offsets = [0, 32], sizes = [1, 32], strides = [1, 1]} : vector<1x128xf32> to vector<1x32xf32>
    %202 = arith.negf %201 : vector<1x32xf32>
    %203 = math.exp %202 : vector<1x32xf32>
    %cst_45 = arith.constant 1.000000e+00 : f32
    %204 = vector.broadcast %cst_45 : f32 to vector<1x32xf32>
    %205 = arith.addf %204, %203 : vector<1x32xf32>
    %206 = arith.divf %204, %205 : vector<1x32xf32>
    %207 = vector.extract_strided_slice %194 {offsets = [0, 64], sizes = [1, 32], strides = [1, 1]} : vector<1x128xf32> to vector<1x32xf32>
    %208 = math.tanh %207 : vector<1x32xf32>
    %209 = vector.extract_strided_slice %194 {offsets = [0, 96], sizes = [1, 32], strides = [1, 1]} : vector<1x128xf32> to vector<1x32xf32>
    %210 = arith.negf %209 : vector<1x32xf32>
    %211 = math.exp %210 : vector<1x32xf32>
    %cst_46 = arith.constant 1.000000e+00 : f32
    %212 = vector.broadcast %cst_46 : f32 to vector<1x32xf32>
    %213 = arith.addf %212, %211 : vector<1x32xf32>
    %214 = arith.divf %212, %213 : vector<1x32xf32>
    %215 = arith.mulf %206, %186 : vector<1x32xf32>
    %216 = arith.mulf %200, %208 : vector<1x32xf32>
    %217 = arith.addf %215, %216 : vector<1x32xf32>
    %218 = math.tanh %217 : vector<1x32xf32>
    %219 = arith.mulf %214, %218 : vector<1x32xf32>
    %c5 = arith.constant 5 : index
    %c0_47 = arith.constant 0 : index
    %220 = vector.load %arg13[%c5, %c0_47] : memref<8x32xf32, #tpu.memory_space<vmem>>, vector<1x32xf32>
    tpu.vector_store %arg13[%c5, %c0_47], %219 {strides = array<i32>} : memref<8x32xf32, #tpu.memory_space<vmem>>, vector<1x32xf32>,
    %221 = vector.extract_strided_slice %12 {offsets = [6, 0], sizes = [1, 128], strides = [1, 1]} : vector<8x128xf32> to vector<1x128xf32>
    %222 = vector.extract_strided_slice %12 {offsets = [1, 0], sizes = [1, 128], strides = [1, 1]} : vector<8x128xf32> to vector<1x128xf32>
    %223 = arith.select %32, %221, %222 : vector<1x128xi1>, vector<1x128xf32>
    %cst_48 = arith.constant dense<0.000000e+00> : vector<1x128xf32>
    %224 = tpu.matmul %219, %13, %cst_48 {dimension_numbers = #tpu.dot_dimension_numbers<[1], [0], [0], [1], [0, 0, 1, 1], [], []>} : vector<1x32xf32>, vector<32x128xf32>, vector<1x128xf32> -> vector<1x128xf32>
    %225 = arith.addf %223, %224 : vector<1x128xf32>
    %226 = vector.extract_strided_slice %225 {offsets = [0, 0], sizes = [1, 32], strides = [1, 1]} : vector<1x128xf32> to vector<1x32xf32>
    %227 = arith.negf %226 : vector<1x32xf32>
    %228 = math.exp %227 : vector<1x32xf32>
    %cst_49 = arith.constant 1.000000e+00 : f32
    %229 = vector.broadcast %cst_49 : f32 to vector<1x32xf32>
    %230 = arith.addf %229, %228 : vector<1x32xf32>
    %231 = arith.divf %229, %230 : vector<1x32xf32>
    %232 = vector.extract_strided_slice %225 {offsets = [0, 32], sizes = [1, 32], strides = [1, 1]} : vector<1x128xf32> to vector<1x32xf32>
    %233 = arith.negf %232 : vector<1x32xf32>
    %234 = math.exp %233 : vector<1x32xf32>
    %cst_50 = arith.constant 1.000000e+00 : f32
    %235 = vector.broadcast %cst_50 : f32 to vector<1x32xf32>
    %236 = arith.addf %235, %234 : vector<1x32xf32>
    %237 = arith.divf %235, %236 : vector<1x32xf32>
    %238 = vector.extract_strided_slice %225 {offsets = [0, 64], sizes = [1, 32], strides = [1, 1]} : vector<1x128xf32> to vector<1x32xf32>
    %239 = math.tanh %238 : vector<1x32xf32>
    %240 = vector.extract_strided_slice %225 {offsets = [0, 96], sizes = [1, 32], strides = [1, 1]} : vector<1x128xf32> to vector<1x32xf32>
    %241 = arith.negf %240 : vector<1x32xf32>
    %242 = math.exp %241 : vector<1x32xf32>
    %cst_51 = arith.constant 1.000000e+00 : f32
    %243 = vector.broadcast %cst_51 : f32 to vector<1x32xf32>
    %244 = arith.addf %243, %242 : vector<1x32xf32>
    %245 = arith.divf %243, %244 : vector<1x32xf32>
    %246 = arith.mulf %237, %217 : vector<1x32xf32>
    %247 = arith.mulf %231, %239 : vector<1x32xf32>
    %248 = arith.addf %246, %247 : vector<1x32xf32>
    %249 = math.tanh %248 : vector<1x32xf32>
    %250 = arith.mulf %245, %249 : vector<1x32xf32>
    %c6 = arith.constant 6 : index
    %c0_52 = arith.constant 0 : index
    %251 = vector.load %arg13[%c6, %c0_52] : memref<8x32xf32, #tpu.memory_space<vmem>>, vector<1x32xf32>
    tpu.vector_store %arg13[%c6, %c0_52], %250 {strides = array<i32>} : memref<8x32xf32, #tpu.memory_space<vmem>>, vector<1x32xf32>,
    %252 = vector.extract_strided_slice %12 {offsets = [7, 0], sizes = [1, 128], strides = [1, 1]} : vector<8x128xf32> to vector<1x128xf32>
    %253 = vector.extract_strided_slice %12 {offsets = [0, 0], sizes = [1, 128], strides = [1, 1]} : vector<8x128xf32> to vector<1x128xf32>
    %254 = arith.select %32, %252, %253 : vector<1x128xi1>, vector<1x128xf32>
    %cst_53 = arith.constant dense<0.000000e+00> : vector<1x128xf32>
    %255 = tpu.matmul %250, %13, %cst_53 {dimension_numbers = #tpu.dot_dimension_numbers<[1], [0], [0], [1], [0, 0, 1, 1], [], []>} : vector<1x32xf32>, vector<32x128xf32>, vector<1x128xf32> -> vector<1x128xf32>
    %256 = arith.addf %254, %255 : vector<1x128xf32>
    %257 = vector.extract_strided_slice %256 {offsets = [0, 0], sizes = [1, 32], strides = [1, 1]} : vector<1x128xf32> to vector<1x32xf32>
    %258 = arith.negf %257 : vector<1x32xf32>
    %259 = math.exp %258 : vector<1x32xf32>
    %cst_54 = arith.constant 1.000000e+00 : f32
    %260 = vector.broadcast %cst_54 : f32 to vector<1x32xf32>
    %261 = arith.addf %260, %259 : vector<1x32xf32>
    %262 = arith.divf %260, %261 : vector<1x32xf32>
    %263 = vector.extract_strided_slice %256 {offsets = [0, 32], sizes = [1, 32], strides = [1, 1]} : vector<1x128xf32> to vector<1x32xf32>
    %264 = arith.negf %263 : vector<1x32xf32>
    %265 = math.exp %264 : vector<1x32xf32>
    %cst_55 = arith.constant 1.000000e+00 : f32
    %266 = vector.broadcast %cst_55 : f32 to vector<1x32xf32>
    %267 = arith.addf %266, %265 : vector<1x32xf32>
    %268 = arith.divf %266, %267 : vector<1x32xf32>
    %269 = vector.extract_strided_slice %256 {offsets = [0, 64], sizes = [1, 32], strides = [1, 1]} : vector<1x128xf32> to vector<1x32xf32>
    %270 = math.tanh %269 : vector<1x32xf32>
    %271 = vector.extract_strided_slice %256 {offsets = [0, 96], sizes = [1, 32], strides = [1, 1]} : vector<1x128xf32> to vector<1x32xf32>
    %272 = arith.negf %271 : vector<1x32xf32>
    %273 = math.exp %272 : vector<1x32xf32>
    %cst_56 = arith.constant 1.000000e+00 : f32
    %274 = vector.broadcast %cst_56 : f32 to vector<1x32xf32>
    %275 = arith.addf %274, %273 : vector<1x32xf32>
    %276 = arith.divf %274, %275 : vector<1x32xf32>
    %277 = arith.mulf %268, %248 : vector<1x32xf32>
    %278 = arith.mulf %262, %270 : vector<1x32xf32>
    %279 = arith.addf %277, %278 : vector<1x32xf32>
    %280 = math.tanh %279 : vector<1x32xf32>
    %281 = arith.mulf %276, %280 : vector<1x32xf32>
    %c7 = arith.constant 7 : index
    %c0_57 = arith.constant 0 : index
    %282 = vector.load %arg13[%c7, %c0_57] : memref<8x32xf32, #tpu.memory_space<vmem>>, vector<1x32xf32>
    tpu.vector_store %arg13[%c7, %c0_57], %281 {strides = array<i32>} : memref<8x32xf32, #tpu.memory_space<vmem>>, vector<1x32xf32>,
    %c0_58 = arith.constant 0 : index
    %c0_59 = arith.constant 0 : index
    %283 = vector.load %arg13[%c0_58, %c0_59] : memref<8x32xf32, #tpu.memory_space<vmem>>, vector<8x32xf32>
    %284 = vector.extract_strided_slice %283 {offsets = [0, 0], sizes = [8, 16], strides = [1, 1]} : vector<8x32xf32> to vector<8x16xf32>
    %c0_60 = arith.constant 0 : index
    %c0_61 = arith.constant 0 : index
    %285 = vector.load %arg7[%c0_60, %c0_61] : memref<16x5xf32, #tpu.memory_space<vmem>>, vector<16x5xf32>
    %cst_62 = arith.constant dense<0.000000e+00> : vector<8x5xf32>
    %286 = tpu.matmul %284, %285, %cst_62 {dimension_numbers = #tpu.dot_dimension_numbers<[1], [0], [0], [1], [0, 0, 1, 1], [], []>} : vector<8x16xf32>, vector<16x5xf32>, vector<8x5xf32> -> vector<8x5xf32>
    %c0_63 = arith.constant 0 : index
    %c0_64 = arith.constant 0 : index
    %287 = vector.load %arg9[%c0_63, %c0_64] : memref<1x5xf32, #tpu.memory_space<vmem>>, vector<1x5xf32>
    %288 = vector.broadcast %287 : vector<1x5xf32> to vector<8x5xf32>
    %289 = arith.addf %286, %288 : vector<8x5xf32>
    %290 = vector.extract_strided_slice %283 {offsets = [0, 16], sizes = [8, 16], strides = [1, 1]} : vector<8x32xf32> to vector<8x16xf32>
    %c0_65 = arith.constant 0 : index
    %c0_66 = arith.constant 0 : index
    %291 = vector.load %arg8[%c0_65, %c0_66] : memref<16x5xf32, #tpu.memory_space<vmem>>, vector<16x5xf32>
    %cst_67 = arith.constant dense<0.000000e+00> : vector<8x5xf32>
    %292 = tpu.matmul %290, %291, %cst_67 {dimension_numbers = #tpu.dot_dimension_numbers<[1], [0], [0], [1], [0, 0, 1, 1], [], []>} : vector<8x16xf32>, vector<16x5xf32>, vector<8x5xf32> -> vector<8x5xf32>
    %c0_68 = arith.constant 0 : index
    %c0_69 = arith.constant 0 : index
    %293 = vector.load %arg10[%c0_68, %c0_69] : memref<5x5xf32, #tpu.memory_space<vmem>>, vector<5x5xf32>
    %294 = tpu.iota {dimensions = array<i32: 0>} : vector<5x5xi32>
    %295 = tpu.iota {dimensions = array<i32: 1>} : vector<5x5xi32>
    %296 = tpu.iota {dimensions = array<i32: 0>} : vector<5x1xi32>
    %297 = arith.cmpi eq, %294, %295 : vector<5x5xi32>
    %c3_i32 = arith.constant 3 : i32
    %298 = vector.broadcast %c3_i32 : i32 to vector<5x1xi32>
    %299 = arith.cmpi eq, %296, %298 : vector<5x1xi32>
    %cst_70 = arith.constant 0.000000e+00 : f32
    %cst_71 = arith.constant -1.000000e+04 : f32
    %300 = vector.broadcast %cst_70 : f32 to vector<5x1xf32>
    %301 = vector.broadcast %cst_71 : f32 to vector<5x1xf32>
    %302 = arith.select %299, %300, %301 : vector<5x1xi1>, vector<5x1xf32>
    %303 = vector.broadcast %302 : vector<5x1xf32> to vector<5x5xf32>
    %304 = arith.addf %303, %293 : vector<5x5xf32>
    %cst_72 = arith.constant dense<0xFF800000> : vector<5xf32>
    %305 = vector.multi_reduction <maximumf>, %304, %cst_72 [0] : vector<5x5xf32> to vector<5xf32>
    %306 = vector.shape_cast %305 : vector<5xf32> to vector<1x5xf32>
    %307 = vector.broadcast %306 : vector<1x5xf32> to vector<5x5xf32>
    %308 = arith.cmpf oeq, %304, %307 : vector<5x5xf32>
    %c5_i32 = arith.constant 5 : i32
    %309 = vector.broadcast %c5_i32 : i32 to vector<5x5xi32>
    %310 = arith.select %308, %294, %309 : vector<5x5xi1>, vector<5x5xi32>
    %cst_73 = arith.constant dense<2147483647> : vector<5xi32>
    %311 = vector.multi_reduction <minsi>, %310, %cst_73 [0] : vector<5x5xi32> to vector<5xi32>
    %312 = vector.shape_cast %311 : vector<5xi32> to vector<1x5xi32>
    %313 = vector.extract_strided_slice %289 {offsets = [0, 0], sizes = [1, 5], strides = [1, 1]} : vector<8x5xf32> to vector<1x5xf32>
    %314 = arith.addf %306, %313 : vector<1x5xf32>
    %315 = vector.extract_strided_slice %292 {offsets = [7, 0], sizes = [1, 5], strides = [1, 1]} : vector<8x5xf32> to vector<1x5xf32>
    %316 = arith.addf %314, %315 : vector<1x5xf32>
    %317 = vector.shape_cast %316 : vector<1x5xf32> to vector<1x5xf32>
    %318 = vector.broadcast %317 : vector<1x5xf32> to vector<5x5xf32>
    %cst_74 = arith.constant 0.000000e+00 : f32
    %319 = vector.broadcast %cst_74 : f32 to vector<5x5xf32>
    %320 = arith.select %297, %318, %319 : vector<5x5xi1>, vector<5x5xf32>
    %cst_75 = arith.constant dense<0.000000e+00> : vector<5xf32>
    %321 = vector.multi_reduction <add>, %320, %cst_75 [1] : vector<5x5xf32> to vector<5xf32>
    %322 = vector.shape_cast %321 : vector<5xf32> to vector<5x1xf32>
    %323 = vector.broadcast %322 : vector<5x1xf32> to vector<5x5xf32>
    %324 = arith.addf %323, %293 : vector<5x5xf32>
    %cst_76 = arith.constant dense<0xFF800000> : vector<5xf32>
    %325 = vector.multi_reduction <maximumf>, %324, %cst_76 [0] : vector<5x5xf32> to vector<5xf32>
    %326 = vector.shape_cast %325 : vector<5xf32> to vector<1x5xf32>
    %327 = vector.broadcast %326 : vector<1x5xf32> to vector<5x5xf32>
    %328 = arith.cmpf oeq, %324, %327 : vector<5x5xf32>
    %c5_i32_77 = arith.constant 5 : i32
    %329 = vector.broadcast %c5_i32_77 : i32 to vector<5x5xi32>
    %330 = arith.select %328, %294, %329 : vector<5x5xi1>, vector<5x5xi32>
    %cst_78 = arith.constant dense<2147483647> : vector<5xi32>
    %331 = vector.multi_reduction <minsi>, %330, %cst_78 [0] : vector<5x5xi32> to vector<5xi32>
    %332 = vector.shape_cast %331 : vector<5xi32> to vector<1x5xi32>
    %333 = vector.extract_strided_slice %289 {offsets = [1, 0], sizes = [1, 5], strides = [1, 1]} : vector<8x5xf32> to vector<1x5xf32>
    %334 = arith.addf %326, %333 : vector<1x5xf32>
    %335 = vector.extract_strided_slice %292 {offsets = [6, 0], sizes = [1, 5], strides = [1, 1]} : vector<8x5xf32> to vector<1x5xf32>
    %336 = arith.addf %334, %335 : vector<1x5xf32>
    %337 = vector.shape_cast %336 : vector<1x5xf32> to vector<1x5xf32>
    %338 = vector.broadcast %337 : vector<1x5xf32> to vector<5x5xf32>
    %cst_79 = arith.constant 0.000000e+00 : f32
    %339 = vector.broadcast %cst_79 : f32 to vector<5x5xf32>
    %340 = arith.select %297, %338, %339 : vector<5x5xi1>, vector<5x5xf32>
    %cst_80 = arith.constant dense<0.000000e+00> : vector<5xf32>
    %341 = vector.multi_reduction <add>, %340, %cst_80 [1] : vector<5x5xf32> to vector<5xf32>
    %342 = vector.shape_cast %341 : vector<5xf32> to vector<5x1xf32>
    %343 = vector.broadcast %342 : vector<5x1xf32> to vector<5x5xf32>
    %344 = arith.addf %343, %293 : vector<5x5xf32>
    %cst_81 = arith.constant dense<0xFF800000> : vector<5xf32>
    %345 = vector.multi_reduction <maximumf>, %344, %cst_81 [0] : vector<5x5xf32> to vector<5xf32>
    %346 = vector.shape_cast %345 : vector<5xf32> to vector<1x5xf32>
    %347 = vector.broadcast %346 : vector<1x5xf32> to vector<5x5xf32>
    %348 = arith.cmpf oeq, %344, %347 : vector<5x5xf32>
    %c5_i32_82 = arith.constant 5 : i32
    %349 = vector.broadcast %c5_i32_82 : i32 to vector<5x5xi32>
    %350 = arith.select %348, %294, %349 : vector<5x5xi1>, vector<5x5xi32>
    %cst_83 = arith.constant dense<2147483647> : vector<5xi32>
    %351 = vector.multi_reduction <minsi>, %350, %cst_83 [0] : vector<5x5xi32> to vector<5xi32>
    %352 = vector.shape_cast %351 : vector<5xi32> to vector<1x5xi32>
    %353 = vector.extract_strided_slice %289 {offsets = [2, 0], sizes = [1, 5], strides = [1, 1]} : vector<8x5xf32> to vector<1x5xf32>
    %354 = arith.addf %346, %353 : vector<1x5xf32>
    %355 = vector.extract_strided_slice %292 {offsets = [5, 0], sizes = [1, 5], strides = [1, 1]} : vector<8x5xf32> to vector<1x5xf32>
    %356 = arith.addf %354, %355 : vector<1x5xf32>
    %357 = vector.shape_cast %356 : vector<1x5xf32> to vector<1x5xf32>
    %358 = vector.broadcast %357 : vector<1x5xf32> to vector<5x5xf32>
    %cst_84 = arith.constant 0.000000e+00 : f32
    %359 = vector.broadcast %cst_84 : f32 to vector<5x5xf32>
    %360 = arith.select %297, %358, %359 : vector<5x5xi1>, vector<5x5xf32>
    %cst_85 = arith.constant dense<0.000000e+00> : vector<5xf32>
    %361 = vector.multi_reduction <add>, %360, %cst_85 [1] : vector<5x5xf32> to vector<5xf32>
    %362 = vector.shape_cast %361 : vector<5xf32> to vector<5x1xf32>
    %363 = vector.broadcast %362 : vector<5x1xf32> to vector<5x5xf32>
    %364 = arith.addf %363, %293 : vector<5x5xf32>
    %cst_86 = arith.constant dense<0xFF800000> : vector<5xf32>
    %365 = vector.multi_reduction <maximumf>, %364, %cst_86 [0] : vector<5x5xf32> to vector<5xf32>
    %366 = vector.shape_cast %365 : vector<5xf32> to vector<1x5xf32>
    %367 = vector.broadcast %366 : vector<1x5xf32> to vector<5x5xf32>
    %368 = arith.cmpf oeq, %364, %367 : vector<5x5xf32>
    %c5_i32_87 = arith.constant 5 : i32
    %369 = vector.broadcast %c5_i32_87 : i32 to vector<5x5xi32>
    %370 = arith.select %368, %294, %369 : vector<5x5xi1>, vector<5x5xi32>
    %cst_88 = arith.constant dense<2147483647> : vector<5xi32>
    %371 = vector.multi_reduction <minsi>, %370, %cst_88 [0] : vector<5x5xi32> to vector<5xi32>
    %372 = vector.shape_cast %371 : vector<5xi32> to vector<1x5xi32>
    %373 = vector.extract_strided_slice %289 {offsets = [3, 0], sizes = [1, 5], strides = [1, 1]} : vector<8x5xf32> to vector<1x5xf32>
    %374 = arith.addf %366, %373 : vector<1x5xf32>
    %375 = vector.extract_strided_slice %292 {offsets = [4, 0], sizes = [1, 5], strides = [1, 1]} : vector<8x5xf32> to vector<1x5xf32>
    %376 = arith.addf %374, %375 : vector<1x5xf32>
    %377 = vector.shape_cast %376 : vector<1x5xf32> to vector<1x5xf32>
    %378 = vector.broadcast %377 : vector<1x5xf32> to vector<5x5xf32>
    %cst_89 = arith.constant 0.000000e+00 : f32
    %379 = vector.broadcast %cst_89 : f32 to vector<5x5xf32>
    %380 = arith.select %297, %378, %379 : vector<5x5xi1>, vector<5x5xf32>
    %cst_90 = arith.constant dense<0.000000e+00> : vector<5xf32>
    %381 = vector.multi_reduction <add>, %380, %cst_90 [1] : vector<5x5xf32> to vector<5xf32>
    %382 = vector.shape_cast %381 : vector<5xf32> to vector<5x1xf32>
    %383 = vector.broadcast %382 : vector<5x1xf32> to vector<5x5xf32>
    %384 = arith.addf %383, %293 : vector<5x5xf32>
    %cst_91 = arith.constant dense<0xFF800000> : vector<5xf32>
    %385 = vector.multi_reduction <maximumf>, %384, %cst_91 [0] : vector<5x5xf32> to vector<5xf32>
    %386 = vector.shape_cast %385 : vector<5xf32> to vector<1x5xf32>
    %387 = vector.broadcast %386 : vector<1x5xf32> to vector<5x5xf32>
    %388 = arith.cmpf oeq, %384, %387 : vector<5x5xf32>
    %c5_i32_92 = arith.constant 5 : i32
    %389 = vector.broadcast %c5_i32_92 : i32 to vector<5x5xi32>
    %390 = arith.select %388, %294, %389 : vector<5x5xi1>, vector<5x5xi32>
    %cst_93 = arith.constant dense<2147483647> : vector<5xi32>
    %391 = vector.multi_reduction <minsi>, %390, %cst_93 [0] : vector<5x5xi32> to vector<5xi32>
    %392 = vector.shape_cast %391 : vector<5xi32> to vector<1x5xi32>
    %393 = vector.extract_strided_slice %289 {offsets = [4, 0], sizes = [1, 5], strides = [1, 1]} : vector<8x5xf32> to vector<1x5xf32>
    %394 = arith.addf %386, %393 : vector<1x5xf32>
    %395 = vector.extract_strided_slice %292 {offsets = [3, 0], sizes = [1, 5], strides = [1, 1]} : vector<8x5xf32> to vector<1x5xf32>
    %396 = arith.addf %394, %395 : vector<1x5xf32>
    %397 = vector.shape_cast %396 : vector<1x5xf32> to vector<1x5xf32>
    %398 = vector.broadcast %397 : vector<1x5xf32> to vector<5x5xf32>
    %cst_94 = arith.constant 0.000000e+00 : f32
    %399 = vector.broadcast %cst_94 : f32 to vector<5x5xf32>
    %400 = arith.select %297, %398, %399 : vector<5x5xi1>, vector<5x5xf32>
    %cst_95 = arith.constant dense<0.000000e+00> : vector<5xf32>
    %401 = vector.multi_reduction <add>, %400, %cst_95 [1] : vector<5x5xf32> to vector<5xf32>
    %402 = vector.shape_cast %401 : vector<5xf32> to vector<5x1xf32>
    %403 = vector.broadcast %402 : vector<5x1xf32> to vector<5x5xf32>
    %404 = arith.addf %403, %293 : vector<5x5xf32>
    %cst_96 = arith.constant dense<0xFF800000> : vector<5xf32>
    %405 = vector.multi_reduction <maximumf>, %404, %cst_96 [0] : vector<5x5xf32> to vector<5xf32>
    %406 = vector.shape_cast %405 : vector<5xf32> to vector<1x5xf32>
    %407 = vector.broadcast %406 : vector<1x5xf32> to vector<5x5xf32>
    %408 = arith.cmpf oeq, %404, %407 : vector<5x5xf32>
    %c5_i32_97 = arith.constant 5 : i32
    %409 = vector.broadcast %c5_i32_97 : i32 to vector<5x5xi32>
    %410 = arith.select %408, %294, %409 : vector<5x5xi1>, vector<5x5xi32>
    %cst_98 = arith.constant dense<2147483647> : vector<5xi32>
    %411 = vector.multi_reduction <minsi>, %410, %cst_98 [0] : vector<5x5xi32> to vector<5xi32>
    %412 = vector.shape_cast %411 : vector<5xi32> to vector<1x5xi32>
    %413 = vector.extract_strided_slice %289 {offsets = [5, 0], sizes = [1, 5], strides = [1, 1]} : vector<8x5xf32> to vector<1x5xf32>
    %414 = arith.addf %406, %413 : vector<1x5xf32>
    %415 = vector.extract_strided_slice %292 {offsets = [2, 0], sizes = [1, 5], strides = [1, 1]} : vector<8x5xf32> to vector<1x5xf32>
    %416 = arith.addf %414, %415 : vector<1x5xf32>
    %417 = vector.shape_cast %416 : vector<1x5xf32> to vector<1x5xf32>
    %418 = vector.broadcast %417 : vector<1x5xf32> to vector<5x5xf32>
    %cst_99 = arith.constant 0.000000e+00 : f32
    %419 = vector.broadcast %cst_99 : f32 to vector<5x5xf32>
    %420 = arith.select %297, %418, %419 : vector<5x5xi1>, vector<5x5xf32>
    %cst_100 = arith.constant dense<0.000000e+00> : vector<5xf32>
    %421 = vector.multi_reduction <add>, %420, %cst_100 [1] : vector<5x5xf32> to vector<5xf32>
    %422 = vector.shape_cast %421 : vector<5xf32> to vector<5x1xf32>
    %423 = vector.broadcast %422 : vector<5x1xf32> to vector<5x5xf32>
    %424 = arith.addf %423, %293 : vector<5x5xf32>
    %cst_101 = arith.constant dense<0xFF800000> : vector<5xf32>
    %425 = vector.multi_reduction <maximumf>, %424, %cst_101 [0] : vector<5x5xf32> to vector<5xf32>
    %426 = vector.shape_cast %425 : vector<5xf32> to vector<1x5xf32>
    %427 = vector.broadcast %426 : vector<1x5xf32> to vector<5x5xf32>
    %428 = arith.cmpf oeq, %424, %427 : vector<5x5xf32>
    %c5_i32_102 = arith.constant 5 : i32
    %429 = vector.broadcast %c5_i32_102 : i32 to vector<5x5xi32>
    %430 = arith.select %428, %294, %429 : vector<5x5xi1>, vector<5x5xi32>
    %cst_103 = arith.constant dense<2147483647> : vector<5xi32>
    %431 = vector.multi_reduction <minsi>, %430, %cst_103 [0] : vector<5x5xi32> to vector<5xi32>
    %432 = vector.shape_cast %431 : vector<5xi32> to vector<1x5xi32>
    %433 = vector.extract_strided_slice %289 {offsets = [6, 0], sizes = [1, 5], strides = [1, 1]} : vector<8x5xf32> to vector<1x5xf32>
    %434 = arith.addf %426, %433 : vector<1x5xf32>
    %435 = vector.extract_strided_slice %292 {offsets = [1, 0], sizes = [1, 5], strides = [1, 1]} : vector<8x5xf32> to vector<1x5xf32>
    %436 = arith.addf %434, %435 : vector<1x5xf32>
    %437 = vector.shape_cast %436 : vector<1x5xf32> to vector<1x5xf32>
    %438 = vector.broadcast %437 : vector<1x5xf32> to vector<5x5xf32>
    %cst_104 = arith.constant 0.000000e+00 : f32
    %439 = vector.broadcast %cst_104 : f32 to vector<5x5xf32>
    %440 = arith.select %297, %438, %439 : vector<5x5xi1>, vector<5x5xf32>
    %cst_105 = arith.constant dense<0.000000e+00> : vector<5xf32>
    %441 = vector.multi_reduction <add>, %440, %cst_105 [1] : vector<5x5xf32> to vector<5xf32>
    %442 = vector.shape_cast %441 : vector<5xf32> to vector<5x1xf32>
    %443 = vector.broadcast %442 : vector<5x1xf32> to vector<5x5xf32>
    %444 = arith.addf %443, %293 : vector<5x5xf32>
    %cst_106 = arith.constant dense<0xFF800000> : vector<5xf32>
    %445 = vector.multi_reduction <maximumf>, %444, %cst_106 [0] : vector<5x5xf32> to vector<5xf32>
    %446 = vector.shape_cast %445 : vector<5xf32> to vector<1x5xf32>
    %447 = vector.broadcast %446 : vector<1x5xf32> to vector<5x5xf32>
    %448 = arith.cmpf oeq, %444, %447 : vector<5x5xf32>
    %c5_i32_107 = arith.constant 5 : i32
    %449 = vector.broadcast %c5_i32_107 : i32 to vector<5x5xi32>
    %450 = arith.select %448, %294, %449 : vector<5x5xi1>, vector<5x5xi32>
    %cst_108 = arith.constant dense<2147483647> : vector<5xi32>
    %451 = vector.multi_reduction <minsi>, %450, %cst_108 [0] : vector<5x5xi32> to vector<5xi32>
    %452 = vector.shape_cast %451 : vector<5xi32> to vector<1x5xi32>
    %453 = vector.extract_strided_slice %289 {offsets = [7, 0], sizes = [1, 5], strides = [1, 1]} : vector<8x5xf32> to vector<1x5xf32>
    %454 = arith.addf %446, %453 : vector<1x5xf32>
    %455 = vector.extract_strided_slice %292 {offsets = [0, 0], sizes = [1, 5], strides = [1, 1]} : vector<8x5xf32> to vector<1x5xf32>
    %456 = arith.addf %454, %455 : vector<1x5xf32>
    %457 = vector.shape_cast %456 : vector<1x5xf32> to vector<1x5xf32>
    %458 = vector.broadcast %457 : vector<1x5xf32> to vector<5x5xf32>
    %cst_109 = arith.constant 0.000000e+00 : f32
    %459 = vector.broadcast %cst_109 : f32 to vector<5x5xf32>
    %460 = arith.select %297, %458, %459 : vector<5x5xi1>, vector<5x5xf32>
    %cst_110 = arith.constant dense<0.000000e+00> : vector<5xf32>
    %461 = vector.multi_reduction <add>, %460, %cst_110 [1] : vector<5x5xf32> to vector<5xf32>
    %462 = vector.shape_cast %461 : vector<5xf32> to vector<5x1xf32>
    %c0_111 = arith.constant 0 : index
    %c0_112 = arith.constant 0 : index
    %463 = vector.load %arg11[%c0_111, %c0_112] : memref<5x1xf32, #tpu.memory_space<vmem>>, vector<5x1xf32>
    %464 = arith.addf %462, %463 : vector<5x1xf32>
    %cst_113 = arith.constant dense<0xFF800000> : vector<1xf32>
    %465 = vector.multi_reduction <maximumf>, %464, %cst_113 [0] : vector<5x1xf32> to vector<1xf32>
    %466 = vector.shape_cast %465 : vector<1xf32> to vector<1x1xf32>
    %467 = vector.broadcast %466 : vector<1x1xf32> to vector<5x1xf32>
    %468 = arith.cmpf oeq, %464, %467 : vector<5x1xf32>
    %c5_i32_114 = arith.constant 5 : i32
    %469 = vector.broadcast %c5_i32_114 : i32 to vector<5x1xi32>
    %470 = arith.select %468, %296, %469 : vector<5x1xi1>, vector<5x1xi32>
    %cst_115 = arith.constant dense<2147483647> : vector<1xi32>
    %471 = vector.multi_reduction <minsi>, %470, %cst_115 [0] : vector<5x1xi32> to vector<1xi32>
    %472 = vector.shape_cast %471 : vector<1xi32> to vector<1x1xi32>
    %473 = tpu.iota {dimensions = array<i32: 1>} : vector<1x5xi32>
    %474 = tpu.iota {dimensions = array<i32: 1>} : vector<1x128xi32>
    %c0_i32_116 = arith.constant 0 : i32
    %475 = vector.broadcast %c0_i32_116 : i32 to vector<1x128xi32>
    %c7_i32 = arith.constant 7 : i32
    %476 = vector.broadcast %c7_i32 : i32 to vector<1x128xi32>
    %477 = arith.cmpi eq, %474, %476 : vector<1x128xi32>
    %478 = vector.shape_cast %472 : vector<1x1xi32> to vector<1x1xi32>
    %479 = vector.broadcast %478 : vector<1x1xi32> to vector<1x128xi32>
    %480 = arith.select %477, %479, %475 : vector<1x128xi1>, vector<1x128xi32>
    %481 = vector.broadcast %472 : vector<1x1xi32> to vector<1x5xi32>
    %482 = arith.cmpi eq, %473, %481 : vector<1x5xi32>
    %c0_i32_117 = arith.constant 0 : i32
    %483 = vector.broadcast %c0_i32_117 : i32 to vector<1x5xi32>
    %484 = arith.select %482, %452, %483 : vector<1x5xi1>, vector<1x5xi32>
    %cst_118 = arith.constant dense<-2147483648> : vector<1xi32>
    %485 = vector.multi_reduction <maxsi>, %484, %cst_118 [1] : vector<1x5xi32> to vector<1xi32>
    %486 = vector.shape_cast %485 : vector<1xi32> to vector<1x1xi32>
    %c6_i32 = arith.constant 6 : i32
    %487 = vector.broadcast %c6_i32 : i32 to vector<1x128xi32>
    %488 = arith.cmpi eq, %474, %487 : vector<1x128xi32>
    %489 = vector.shape_cast %486 : vector<1x1xi32> to vector<1x1xi32>
    %490 = vector.broadcast %489 : vector<1x1xi32> to vector<1x128xi32>
    %491 = arith.select %488, %490, %480 : vector<1x128xi1>, vector<1x128xi32>
    %492 = vector.broadcast %486 : vector<1x1xi32> to vector<1x5xi32>
    %493 = arith.cmpi eq, %473, %492 : vector<1x5xi32>
    %c0_i32_119 = arith.constant 0 : i32
    %494 = vector.broadcast %c0_i32_119 : i32 to vector<1x5xi32>
    %495 = arith.select %493, %432, %494 : vector<1x5xi1>, vector<1x5xi32>
    %cst_120 = arith.constant dense<-2147483648> : vector<1xi32>
    %496 = vector.multi_reduction <maxsi>, %495, %cst_120 [1] : vector<1x5xi32> to vector<1xi32>
    %497 = vector.shape_cast %496 : vector<1xi32> to vector<1x1xi32>
    %c5_i32_121 = arith.constant 5 : i32
    %498 = vector.broadcast %c5_i32_121 : i32 to vector<1x128xi32>
    %499 = arith.cmpi eq, %474, %498 : vector<1x128xi32>
    %500 = vector.shape_cast %497 : vector<1x1xi32> to vector<1x1xi32>
    %501 = vector.broadcast %500 : vector<1x1xi32> to vector<1x128xi32>
    %502 = arith.select %499, %501, %491 : vector<1x128xi1>, vector<1x128xi32>
    %503 = vector.broadcast %497 : vector<1x1xi32> to vector<1x5xi32>
    %504 = arith.cmpi eq, %473, %503 : vector<1x5xi32>
    %c0_i32_122 = arith.constant 0 : i32
    %505 = vector.broadcast %c0_i32_122 : i32 to vector<1x5xi32>
    %506 = arith.select %504, %412, %505 : vector<1x5xi1>, vector<1x5xi32>
    %cst_123 = arith.constant dense<-2147483648> : vector<1xi32>
    %507 = vector.multi_reduction <maxsi>, %506, %cst_123 [1] : vector<1x5xi32> to vector<1xi32>
    %508 = vector.shape_cast %507 : vector<1xi32> to vector<1x1xi32>
    %c4_i32 = arith.constant 4 : i32
    %509 = vector.broadcast %c4_i32 : i32 to vector<1x128xi32>
    %510 = arith.cmpi eq, %474, %509 : vector<1x128xi32>
    %511 = vector.shape_cast %508 : vector<1x1xi32> to vector<1x1xi32>
    %512 = vector.broadcast %511 : vector<1x1xi32> to vector<1x128xi32>
    %513 = arith.select %510, %512, %502 : vector<1x128xi1>, vector<1x128xi32>
    %514 = vector.broadcast %508 : vector<1x1xi32> to vector<1x5xi32>
    %515 = arith.cmpi eq, %473, %514 : vector<1x5xi32>
    %c0_i32_124 = arith.constant 0 : i32
    %516 = vector.broadcast %c0_i32_124 : i32 to vector<1x5xi32>
    %517 = arith.select %515, %392, %516 : vector<1x5xi1>, vector<1x5xi32>
    %cst_125 = arith.constant dense<-2147483648> : vector<1xi32>
    %518 = vector.multi_reduction <maxsi>, %517, %cst_125 [1] : vector<1x5xi32> to vector<1xi32>
    %519 = vector.shape_cast %518 : vector<1xi32> to vector<1x1xi32>
    %c3_i32_126 = arith.constant 3 : i32
    %520 = vector.broadcast %c3_i32_126 : i32 to vector<1x128xi32>
    %521 = arith.cmpi eq, %474, %520 : vector<1x128xi32>
    %522 = vector.shape_cast %519 : vector<1x1xi32> to vector<1x1xi32>
    %523 = vector.broadcast %522 : vector<1x1xi32> to vector<1x128xi32>
    %524 = arith.select %521, %523, %513 : vector<1x128xi1>, vector<1x128xi32>
    %525 = vector.broadcast %519 : vector<1x1xi32> to vector<1x5xi32>
    %526 = arith.cmpi eq, %473, %525 : vector<1x5xi32>
    %c0_i32_127 = arith.constant 0 : i32
    %527 = vector.broadcast %c0_i32_127 : i32 to vector<1x5xi32>
    %528 = arith.select %526, %372, %527 : vector<1x5xi1>, vector<1x5xi32>
    %cst_128 = arith.constant dense<-2147483648> : vector<1xi32>
    %529 = vector.multi_reduction <maxsi>, %528, %cst_128 [1] : vector<1x5xi32> to vector<1xi32>
    %530 = vector.shape_cast %529 : vector<1xi32> to vector<1x1xi32>
    %c2_i32 = arith.constant 2 : i32
    %531 = vector.broadcast %c2_i32 : i32 to vector<1x128xi32>
    %532 = arith.cmpi eq, %474, %531 : vector<1x128xi32>
    %533 = vector.shape_cast %530 : vector<1x1xi32> to vector<1x1xi32>
    %534 = vector.broadcast %533 : vector<1x1xi32> to vector<1x128xi32>
    %535 = arith.select %532, %534, %524 : vector<1x128xi1>, vector<1x128xi32>
    %536 = vector.broadcast %530 : vector<1x1xi32> to vector<1x5xi32>
    %537 = arith.cmpi eq, %473, %536 : vector<1x5xi32>
    %c0_i32_129 = arith.constant 0 : i32
    %538 = vector.broadcast %c0_i32_129 : i32 to vector<1x5xi32>
    %539 = arith.select %537, %352, %538 : vector<1x5xi1>, vector<1x5xi32>
    %cst_130 = arith.constant dense<-2147483648> : vector<1xi32>
    %540 = vector.multi_reduction <maxsi>, %539, %cst_130 [1] : vector<1x5xi32> to vector<1xi32>
    %541 = vector.shape_cast %540 : vector<1xi32> to vector<1x1xi32>
    %c1_i32_131 = arith.constant 1 : i32
    %542 = vector.broadcast %c1_i32_131 : i32 to vector<1x128xi32>
    %543 = arith.cmpi eq, %474, %542 : vector<1x128xi32>
    %544 = vector.shape_cast %541 : vector<1x1xi32> to vector<1x1xi32>
    %545 = vector.broadcast %544 : vector<1x1xi32> to vector<1x128xi32>
    %546 = arith.select %543, %545, %535 : vector<1x128xi1>, vector<1x128xi32>
    %547 = vector.broadcast %541 : vector<1x1xi32> to vector<1x5xi32>
    %548 = arith.cmpi eq, %473, %547 : vector<1x5xi32>
    %c0_i32_132 = arith.constant 0 : i32
    %549 = vector.broadcast %c0_i32_132 : i32 to vector<1x5xi32>
    %550 = arith.select %548, %332, %549 : vector<1x5xi1>, vector<1x5xi32>
    %cst_133 = arith.constant dense<-2147483648> : vector<1xi32>
    %551 = vector.multi_reduction <maxsi>, %550, %cst_133 [1] : vector<1x5xi32> to vector<1xi32>
    %552 = vector.shape_cast %551 : vector<1xi32> to vector<1x1xi32>
    %c0_i32_134 = arith.constant 0 : i32
    %553 = vector.broadcast %c0_i32_134 : i32 to vector<1x128xi32>
    %554 = arith.cmpi eq, %474, %553 : vector<1x128xi32>
    %555 = vector.shape_cast %552 : vector<1x1xi32> to vector<1x1xi32>
    %556 = vector.broadcast %555 : vector<1x1xi32> to vector<1x128xi32>
    %557 = arith.select %554, %556, %546 : vector<1x128xi1>, vector<1x128xi32>
    %558 = vector.broadcast %552 : vector<1x1xi32> to vector<1x5xi32>
    %559 = arith.cmpi eq, %473, %558 : vector<1x5xi32>
    %c0_i32_135 = arith.constant 0 : i32
    %560 = vector.broadcast %c0_i32_135 : i32 to vector<1x5xi32>
    %561 = arith.select %559, %312, %560 : vector<1x5xi1>, vector<1x5xi32>
    %cst_136 = arith.constant dense<-2147483648> : vector<1xi32>
    %562 = vector.multi_reduction <maxsi>, %561, %cst_136 [1] : vector<1x5xi32> to vector<1xi32>
    %563 = vector.shape_cast %562 : vector<1xi32> to vector<1x1xi32>
    %c8_i32 = arith.constant 8 : i32
    %564 = vector.broadcast %c8_i32 : i32 to vector<1x128xi32>
    %565 = arith.cmpi eq, %474, %564 : vector<1x128xi32>
    %566 = vector.shape_cast %563 : vector<1x1xi32> to vector<1x1xi32>
    %567 = vector.broadcast %566 : vector<1x1xi32> to vector<1x128xi32>
    %568 = arith.select %565, %567, %557 : vector<1x128xi1>, vector<1x128xi32>
    %c9_i32 = arith.constant 9 : i32
    %569 = vector.broadcast %c9_i32 : i32 to vector<1x128xi32>
    %570 = arith.cmpi eq, %474, %569 : vector<1x128xi32>
    %571 = tpu.bitcast %466 : vector<1x1xf32> -> vector<1x1xi32>
    %572 = vector.shape_cast %571 : vector<1x1xi32> to vector<1x1xi32>
    %573 = vector.broadcast %572 : vector<1x1xi32> to vector<1x128xi32>
    %574 = arith.select %570, %573, %568 : vector<1x128xi1>, vector<1x128xi32>
    %c0_137 = arith.constant 0 : index
    %c0_138 = arith.constant 0 : index
    %575 = vector.load %arg12[%c0_137, %c0_138] : memref<1x128xi32, #tpu.memory_space<vmem>>, vector<1x128xi32>
    tpu.vector_store %arg12[%c0_137, %c0_138], %574 {strides = array<i32>} : memref<1x128xi32, #tpu.memory_space<vmem>>, vector<1x128xi32>,
    return
  }
}

</mosaic_0001>

<bundles_post_ra>
// kernel: bilstm_crf_forward.1
= control target key start
LH: loop header
LB: loop body
LE: loop exit
PB: predicated region body
PF: predicated region fallthrough
CT: control target
= control target key end

     0   :  { %v2009_v0 = vmov 0   ;;  %v2010_v2 = vmov 0.0   ;;  %vm2011_vm0 = vmmov 0   ;;  %v42_v8 = vlaneseq  ;;  %s2012_s22 = smov 32   ;;  %s2551_s0 = inlined_call_operand.vmem [shape: s32[8,1], index: 0, kind: input, shape index: {}]   ;;  %s2552_s1 = inlined_call_operand.vmem [shape: f32[24,16], index: 1, kind: input, shape index: {}]   ;;  %s2553_s2 = inlined_call_operand.vmem [shape: f32[16,128], index: 2, kind: input, shape index: {}]   ;;  %s2554_s3 = inlined_call_operand.vmem [shape: f32[32,128], index: 3, kind: input, shape index: {}]   ;;  %s2555_s6 = inlined_call_operand.vmem [shape: f32[1,32], index: 6, kind: input, shape index: {}]   ;;  %s2556_s5 = inlined_call_operand.vmem [shape: f32[1,32], index: 5, kind: input, shape index: {}]   ;;  %s2557_s4 = inlined_call_operand.vmem [shape: f32[1,128], index: 4, kind: input, shape index: {}]   ;;  %s2558_s7 = inlined_call_operand.vmem [shape: f32[16,5], index: 7, kind: input, shape index: {}]   ;;  %s2559_s8 = inlined_call_operand.vmem [shape: f32[16,5], index: 8, kind: input, shape index: {}]   ;;  %s2560_s10 = inlined_call_operand.vmem [shape: f32[5,5], index: 10, kind: input, shape index: {}]   ;;  %s2561_s9 = inlined_call_operand.vmem [shape: f32[1,5], index: 9, kind: input, shape index: {}]   ;;  %s2562_s11 = inlined_call_operand.vmem [shape: f32[5,1], index: 11, kind: input, shape index: {}]   ;;  %s2563_s12 = inlined_call_operand.vmem [shape: s32[1,128], index: 12, kind: output, shape index: {}]  }
   0x1   :  { %1944 = vset.pattern.permute.xlu0 %v2009_v0  ;;  %v41_v1 = vld [vmem:[%s2551_s0] sm:$0xff]  ;;  %1819 = vmatprep.subr.mxu0 %v2010_v2  ;;  %v52_v3 = vld [vmem:[%s2552_s1 + $0x10] sm:$0xff]  ;;  %v51_v4 = vld [vmem:[%s2552_s1 + $0x8] sm:$0xff]  ;;  %vm53_vm1 = vcmask 195584   ;;  %vm136_vm3 = vcmask 130048   ;;  %vm233_vm4 = vcmask 261120  }
   0x2   :  { %45 = vperm.xlu0 %1944, %v41_v1   ;;  %1820 = vmatpush3.msra.mxu0 %v52_v3  ;;  %v128_v5 = vld [vmem:[%s2553_s2 + $0x8] sm:$0xff]  ;;  %v50_v6 = vld [vmem:[%s2552_s1] sm:$0xff]  ;;  %v2111_v9 = vand.u32 127, %v42_v8  ;;  %v2120_v12 = vld [vmem:[%s2554_s3 + $0x18] sm:$0xff]  ;;  %vm344_vm6 = vcmask 253952   ;;  %vm456_vm7 = vcmask 254977  }
   0x3   :  { %1821 = vmatprep.subr.mxu0 %v2010_v2  ;;  %1825 = vmatprep.mubr.msk.f32.mxu0 %vm2011_vm0, %v2010_v2  ;;  %v127_v7 = vld [vmem:[%s2553_s2] sm:$0xff]  ;;  %v2127_v13 = vld [vmem:[%s2554_s3 + $0x10] sm:$0xff]  ;;  %v2133_v14 = vld [vmem:[%s2554_s3 + $0x8] sm:$0xff]  ;;  %vm686_vm8 = vcmask 257027   ;;  %vm910_vm9 = vcmask 259077   ;;  %vm571_vm10 = vcmask 256002  }
   0x4   :  { %1822 = vmatpush3.msra.mxu0 %v51_v4  ;;  %1828 = vmatprep.subr.mxu1 %v2010_v2  ;;  %v2140_v15 = vld [vmem:[%s2554_s3] sm:$0xff]  ;;  %v218_v21 = vand.u32 31, %v2111_v9  ;;  %vm798_vm11 = vcmask 258052   ;;  %vm1022_vm12 = vcmask 260102   ;;  %vm1134_vm13 = vcmask 261127  }
   0x5   :  { %1823 = vmatprep.subr.mxu0 %v2010_v2  ;;  %1829 = vmatpush3.msra.mxu1 %v128_v5  ;;  %v1748_v16 = vld [vmem:[%s2555_s6] ss:$0 sm:$0xff]  ;;  %vm1302_vm15 = vcmask 36864  }
   0x6   :  { %1824 = vmatpush3.msra.mxu0 %v50_v6  ;;  %1830 = vmatprep.subr.mxu1 %v2010_v2  ;;  %v227_v19 = vld [vmem:[%s2556_s5] sm:$0x1]  ;;  %vm226_vm5 = vcmp.lt.s32.totalorder %v218_v21, 16 }
   0x7   :  { %1831 = vmatpush3.msra.mxu1 %v127_v7  ;;  %1832 = vmatprep.mubr.msk.f32.mxu1 %vm2011_vm0, %v2010_v2  ;;  %v1744_v20 = vld [vmem:[%s2557_s4] ss:$0 sm:$0xff]  ;;  %s2013_s4 = smov 64  }
   0x8   :  { %1835 = vmatprep.subr.mxu1 %v2010_v2  ;;  %1846 = vmatprep.subr.mxu0 %v2010_v2 }
   0x9   :  { %320 = vrot.lane.b32.xlu1 %v1748_v16, %s2012_s22 }
  0x7b   :  { %v321_v43 = vpop.permute.xlu1 %320 }
  0x7d   :  { %v46_v10 = vpop.permute.xlu0 %45 }
  0x7e   :  { %vm47_vm2 = vcmp.eq.s32.totalorder %v46_v10, %v2111_v9 }
  0x7f   :  { %v1742_v11 = vsel %vm47_vm2, 1.0, %v2010_v2 }
  0x80   :  { %1826 = vmatmul.mubr.msk.f32.vlgmr.msra.gmra.mxu0 %vm53_vm1, %v1742_v11 }
  0x81   :  { %1854 = vmatprep.mubr.msk.f32.mxu0 %vm2011_vm0, %v2010_v2  ;;  %1847 = vmatpush3.msra.mxu0 %v2120_v12 }
  0x82   :  { %1848 = vmatprep.subr.mxu0 %v2010_v2 }
  0x83   :  { %1849 = vmatpush3.msra.mxu0 %v2127_v13 }
  0x84   :  { %1850 = vmatprep.subr.mxu0 %v2010_v2 }
  0x85   :  { %1851 = vmatpush3.msra.mxu0 %v2133_v14 }
  0x86   :  { %1852 = vmatprep.subr.mxu0 %v2010_v2 }
  0x87   :  { %1853 = vmatpush3.msra.mxu0 %v2140_v15 }
  0x88   :  { %1868 = vmatprep.subr.mxu0 %v2010_v2 }
 0x140   :  { %v123_v17 = vpop.f32.mrf.mxu0 }
 0x141   :  { %1833 = vmatmul.mubr.msk.f32.vlgmr.msra.gmra.mxu1 %vm136_vm3, %v123_v17 }
 0x142   :  { %1836 = vmatpush3.msra.mxu1 %v2120_v12  ;;  %v1827_v18 = vpop.f32.mrf.mxu0  ;;  %1843 = vmatprep.mubr.msk.f32.mxu1 %vm2011_vm0, %v2010_v2 }
 0x143   :  { %1837 = vmatprep.subr.mxu1 %v2010_v2 }
 0x144   :  { %1838 = vmatpush3.msra.mxu1 %v2127_v13 }
 0x145   :  { %1839 = vmatprep.subr.mxu1 %v2010_v2 }
 0x146   :  { %1840 = vmatpush3.msra.mxu1 %v2133_v14 }
 0x147   :  { %1841 = vmatprep.subr.mxu1 %v2010_v2 }
 0x148   :  { %1842 = vmatpush3.msra.mxu1 %v2140_v15 }
 0x149   :  { %1844 = vmatmul.mubr.msk.f32.vlgmr.msra.gmra.mxu1 %vm233_vm4, %v227_v19  ;;  %1857 = vmatprep.subr.mxu1 %v2010_v2 }
 0x14a   :  { %1858 = vmatpush3.msra.mxu1 %v2120_v12  ;;  %1865 = vmatprep.mubr.msk.f32.mxu1 %vm2011_vm0, %v2010_v2 }
 0x14b   :  { %1859 = vmatprep.subr.mxu1 %v2010_v2 }
 0x14c   :  { %1860 = vmatpush3.msra.mxu1 %v2127_v13 }
 0x14d   :  { %1861 = vmatprep.subr.mxu1 %v2010_v2 }
 0x14e   :  { %1862 = vmatpush3.msra.mxu1 %v2133_v14 }
 0x14f   :  { %1863 = vmatprep.subr.mxu1 %v2010_v2 }
 0x150   :  { %1864 = vmatpush3.msra.mxu1 %v2140_v15 }
 0x151   :  { %1879 = vmatprep.subr.mxu1 %v2010_v2 }
 0x201   :  { %v206_v22 = vpop.f32.mrf.mxu1 }
 0x202   :  { %v207_v23 = vadd.f32 %v1744_v20, %v206_v22 }
 0x203   :  { %v1834_v24 = vpop.f32.mrf.mxu1 }
 0x204   :  { %v346_v25 = vrot.slane %v207_v23, 5  ;;  %v458_v26 = vrot.slane %v207_v23, 3  ;;  %v573_v27 = vrot.slane %v207_v23, 1  ;;  %v230_v28 = vrot.slane %v207_v23, 7 }
 0x206   :  { %v2178_v29 = vsel %vm226_vm5, %v207_v23, %v346_v25  ;;  %v2180_v30 = vsel %vm226_vm5, %v207_v23, %v458_v26  ;;  %v2182_v31 = vsel %vm226_vm5, %v207_v23, %v573_v27  ;;  %v2184_v32 = vsel %vm226_vm5, %v207_v23, %v230_v28 }
 0x209   :  { %v303_v33 = vpop.f32.mrf.mxu1 }
 0x20a   :  { %v307_v34 = vadd.f32 %v303_v33, %v2184_v32 }
 0x20b   :  { %v1845_v35 = vpop.f32.mrf.mxu1 }
 0x20c   :  { %1945 = vtanh.f32 %v307_v34  ;;  %v1747_v37 = vmul.f32 -1.442695, %v307_v34 }
 0x20e   :  { %1947 = vpow2.f32 %v1747_v37 }
 0x219   :  { %v1946_v36 = vpop.eup %1945 }
 0x21a   :  { %325 = vrot.lane.b32.xlu0 %v1946_v36, %s2013_s4 }
 0x21b   :  { %v1948_v38 = vpop.eup %1947 }
 0x21c   :  { %v311_v39 = vadd.f32 1.0, %v1948_v38 }
 0x21e   :  { %1949 = vrcp.f32 %v311_v39 }
 0x22b   :  { %v1950_v40 = vpop.eup %1949 }
 0x22c   :  { %v323_v44 = vmul.f32 %v1950_v40, %v321_v43 }
 0x28c   :  { %v326_v41 = vpop.permute.xlu0 %325 }
 0x28d   :  { %v328_v42 = vmul.f32 %v1950_v40, %v326_v41 }
 0x28f   :  { %330 = vrot.lane.b32.xlu1 %v328_v42, %s2012_s22 }
 0x301   :  { %v331_v45 = vpop.permute.xlu1 %330 }
 0x302   :  { %v333_v46 = vadd.f32 %v331_v45, %v323_v44 }
 0x304   :  { %1951 = vtanh.f32 %v333_v46  ;;  %v433_v62 = vrot.slane %v333_v46, 7 }
 0x311   :  { %v1952_v47 = vpop.eup %1951 }
 0x312   :  { %336 = vrot.lane.b32.xlu0 %v1952_v47, %s2013_s4 }
 0x384   :  { %v337_v48 = vpop.permute.xlu0 %336 }
 0x385   :  { %v339_v49 = vmul.f32 %v1950_v40, %v337_v48 }
 0x387   :  { %341 = vrot.lane.b32.xlu1 %v339_v49, %s2012_s22 }
 0x3f9   :  { %v342_v50 = vpop.permute.xlu1 %341 }
 0x3fa   :  { %345 = vst.msk [vmem:[#allocation2] sm:$0x1] %vm344_vm6, %v342_v50  ;;  %1855 = vmatmul.mubr.msk.f32.vlgmr.msra.gmra.mxu0 %vm233_vm4, %v342_v50 }
 0x3fb   :  { %1869 = vmatpush3.msra.mxu0 %v2120_v12  ;;  %1876 = vmatprep.mubr.msk.f32.mxu0 %vm2011_vm0, %v2010_v2 }
 0x3fc   :  { %1870 = vmatprep.subr.mxu0 %v2010_v2 }
 0x3fd   :  { %1871 = vmatpush3.msra.mxu0 %v2127_v13 }
 0x3fe   :  { %1872 = vmatprep.subr.mxu0 %v2010_v2 }
 0x3ff   :  { %1873 = vmatpush3.msra.mxu0 %v2133_v14 }
 0x400   :  { %1874 = vmatprep.subr.mxu0 %v2010_v2 }
 0x401   :  { %1875 = vmatpush3.msra.mxu0 %v2140_v15 }
 0x402   :  { %1890 = vmatprep.subr.mxu0 %v2010_v2 }
 0x4ba   :  { %v417_v51 = vpop.f32.mrf.mxu0 }
 0x4bb   :  { %v422_v52 = vrot.slane %v417_v51, 7 }
 0x4bc   :  { %v1856_v53 = vpop.f32.mrf.mxu0 }
 0x4bd   :  { %v424_v54 = vadd.f32 %v422_v52, %v2178_v29 }
 0x4bf   :  { %1953 = vtanh.f32 %v424_v54  ;;  %v1750_v56 = vmul.f32 -1.442695, %v424_v54 }
 0x4c1   :  { %1955 = vpow2.f32 %v1750_v56 }
 0x4cc   :  { %v1954_v55 = vpop.eup %1953 }
 0x4cd   :  { %437 = vrot.lane.b32.xlu0 %v1954_v55, %s2013_s4 }
 0x4ce   :  { %v1956_v57 = vpop.eup %1955 }
 0x4cf   :  { %v428_v58 = vadd.f32 1.0, %v1956_v57 }
 0x4d1   :  { %1957 = vrcp.f32 %v428_v58 }
 0x4de   :  { %v1958_v59 = vpop.eup %1957 }
 0x4df   :  { %v435_v63 = vmul.f32 %v1958_v59, %v433_v62 }
 0x53f   :  { %v438_v60 = vpop.permute.xlu0 %437 }
 0x540   :  { %v440_v61 = vmul.f32 %v1958_v59, %v438_v60 }
 0x542   :  { %442 = vrot.lane.b32.xlu1 %v440_v61, %s2012_s22 }
 0x5b4   :  { %v443_v0 = vpop.permute.xlu1 %442 }
 0x5b5   :  { %v445_v1 = vadd.f32 %v443_v0, %v435_v63 }
 0x5b7   :  { %1959 = vtanh.f32 %v445_v1  ;;  %v548_v25 = vrot.slane %v445_v1, 7 }
 0x5c4   :  { %v1960_v3 = vpop.eup %1959 }
 0x5c5   :  { %448 = vrot.lane.b32.xlu0 %v1960_v3, %s2013_s4 }
 0x637   :  { %v449_v4 = vpop.permute.xlu0 %448 }
 0x638   :  { %v2206_v5 = vmul.f32 %v1958_v59, %v449_v4 }
 0x63a   :  { %v461_v6 = vrot.slane %v2206_v5, 1 }
 0x63c   :  { %462 = vrot.lane.b32.xlu1 %v461_v6, %s2012_s22 }
 0x6ae   :  { %v463_v7 = vpop.permute.xlu1 %462 }
 0x6af   :  { %1866 = vmatmul.mubr.msk.f32.vlgmr.msra.gmra.mxu1 %vm233_vm4, %v463_v7 }
 0x6b0   :  { %1880 = vmatpush3.msra.mxu1 %v2120_v12  ;;  %1887 = vmatprep.mubr.msk.f32.mxu1 %vm2011_vm0, %v2010_v2 }
 0x6b1   :  { %1881 = vmatprep.subr.mxu1 %v2010_v2 }
 0x6b2   :  { %1882 = vmatpush3.msra.mxu1 %v2127_v13 }
 0x6b3   :  { %1883 = vmatprep.subr.mxu1 %v2010_v2 }
 0x6b4   :  { %1884 = vmatpush3.msra.mxu1 %v2133_v14 }
 0x6b5   :  { %1885 = vmatprep.subr.mxu1 %v2010_v2 }
 0x6b6   :  { %1886 = vmatpush3.msra.mxu1 %v2140_v15 }
 0x6b7   :  { %1901 = vmatprep.subr.mxu1 %v2010_v2 }
 0x76f   :  { %v532_v10 = vpop.f32.mrf.mxu1 }
 0x770   :  { %v537_v11 = vrot.slane %v532_v10, 6 }
 0x771   :  { %v1867_v16 = vpop.f32.mrf.mxu1 }
 0x772   :  { %v539_v17 = vadd.f32 %v537_v11, %v2180_v30 }
 0x774   :  { %1961 = vtanh.f32 %v539_v17  ;;  %v1752_v19 = vmul.f32 -1.442695, %v539_v17 }
 0x776   :  { %1963 = vpow2.f32 %v1752_v19 }
 0x781   :  { %v1962_v18 = vpop.eup %1961 }
 0x782   :  { %552 = vrot.lane.b32.xlu0 %v1962_v18, %s2013_s4 }
 0x783   :  { %v1964_v20 = vpop.eup %1963 }
 0x784   :  { %v543_v21 = vadd.f32 1.0, %v1964_v20 }
 0x786   :  { %1965 = vrcp.f32 %v543_v21 }
 0x793   :  { %v1966_v22 = vpop.eup %1965 }
 0x794   :  { %v550_v26 = vmul.f32 %v1966_v22, %v548_v25 }
 0x7f4   :  { %v553_v23 = vpop.permute.xlu0 %552 }
 0x7f5   :  { %v555_v24 = vmul.f32 %v1966_v22, %v553_v23 }
 0x7f7   :  { %557 = vrot.lane.b32.xlu1 %v555_v24, %s2012_s22 }
 0x869   :  { %v558_v27 = vpop.permute.xlu1 %557 }
 0x86a   :  { %v560_v28 = vadd.f32 %v558_v27, %v550_v26 }
 0x86c   :  { %1967 = vtanh.f32 %v560_v28  ;;  %v663_v49 = vrot.slane %v560_v28, 7 }
 0x879   :  { %v1968_v33 = vpop.eup %1967 }
 0x87a   :  { %563 = vrot.lane.b32.xlu0 %v1968_v33, %s2013_s4 }
 0x8ec   :  { %v564_v34 = vpop.permute.xlu0 %563 }
 0x8ed   :  { %v2225_v35 = vmul.f32 %v1966_v22, %v564_v34 }
 0x8ef   :  { %v576_v36 = vrot.slane %v2225_v35, 2 }
 0x8f1   :  { %577 = vrot.lane.b32.xlu1 %v576_v36, %s2012_s22 }
 0x963   :  { %v578_v37 = vpop.permute.xlu1 %577 }
 0x964   :  { %1877 = vmatmul.mubr.msk.f32.vlgmr.msra.gmra.mxu0 %vm233_vm4, %v578_v37 }
 0x965   :  { %1891 = vmatpush3.msra.mxu0 %v2120_v12  ;;  %1898 = vmatprep.mubr.msk.f32.mxu0 %vm2011_vm0, %v2010_v2 }
 0x966   :  { %1892 = vmatprep.subr.mxu0 %v2010_v2 }
 0x967   :  { %1893 = vmatpush3.msra.mxu0 %v2127_v13 }
 0x968   :  { %1894 = vmatprep.subr.mxu0 %v2010_v2 }
 0x969   :  { %1895 = vmatpush3.msra.mxu0 %v2133_v14 }
 0x96a   :  { %1896 = vmatprep.subr.mxu0 %v2010_v2 }
 0x96b   :  { %1897 = vmatpush3.msra.mxu0 %v2140_v15 }
 0x96c   :  { %1912 = vmatprep.subr.mxu0 %v2010_v2 }
 0xa24   :  { %v647_v38 = vpop.f32.mrf.mxu0 }
 0xa25   :  { %v652_v39 = vrot.slane %v647_v38, 5 }
 0xa26   :  { %v1878_v40 = vpop.f32.mrf.mxu0 }
 0xa27   :  { %v654_v41 = vadd.f32 %v652_v39, %v2182_v31 }
 0xa29   :  { %1969 = vtanh.f32 %v654_v41  ;;  %v1754_v43 = vmul.f32 -1.442695, %v654_v41 }
 0xa2b   :  { %1971 = vpow2.f32 %v1754_v43 }
 0xa36   :  { %v1970_v42 = vpop.eup %1969 }
 0xa37   :  { %667 = vrot.lane.b32.xlu0 %v1970_v42, %s2013_s4 }
 0xa38   :  { %v1972_v44 = vpop.eup %1971 }
 0xa39   :  { %v658_v45 = vadd.f32 1.0, %v1972_v44 }
 0xa3b   :  { %1973 = vrcp.f32 %v658_v45 }
 0xa48   :  { %v1974_v46 = vpop.eup %1973 }
 0xa49   :  { %v665_v50 = vmul.f32 %v1974_v46, %v663_v49 }
 0xaa9   :  { %v668_v47 = vpop.permute.xlu0 %667 }
 0xaaa   :  { %v670_v48 = vmul.f32 %v1974_v46, %v668_v47 }
 0xaac   :  { %672 = vrot.lane.b32.xlu1 %v670_v48, %s2012_s22 }
 0xb1e   :  { %v673_v51 = vpop.permute.xlu1 %672 }
 0xb1f   :  { %v675_v52 = vadd.f32 %v673_v51, %v665_v50 }
 0xb21   :  { %1975 = vtanh.f32 %v675_v52  ;;  %v775_v7 = vrot.slane %v675_v52, 7 }
 0xb2e   :  { %v1976_v53 = vpop.eup %1975 }
 0xb2f   :  { %678 = vrot.lane.b32.xlu0 %v1976_v53, %s2013_s4 }
 0xba1   :  { %v679_v54 = vpop.permute.xlu0 %678 }
 0xba2   :  { %v2244_v55 = vmul.f32 %v1974_v46, %v679_v54 }
 0xba4   :  { %v688_v56 = vrot.slane %v2244_v55, 3 }
 0xba6   :  { %689 = vrot.lane.b32.xlu1 %v688_v56, %s2012_s22 }
 0xc18   :  { %v690_v57 = vpop.permute.xlu1 %689 }
 0xc19   :  { %1888 = vmatmul.mubr.msk.f32.vlgmr.msra.gmra.mxu1 %vm233_vm4, %v690_v57 }
 0xc1a   :  { %1902 = vmatpush3.msra.mxu1 %v2120_v12  ;;  %1909 = vmatprep.mubr.msk.f32.mxu1 %vm2011_vm0, %v2010_v2 }
 0xc1b   :  { %1903 = vmatprep.subr.mxu1 %v2010_v2 }
 0xc1c   :  { %1904 = vmatpush3.msra.mxu1 %v2127_v13 }
 0xc1d   :  { %1905 = vmatprep.subr.mxu1 %v2010_v2 }
 0xc1e   :  { %1906 = vmatpush3.msra.mxu1 %v2133_v14 }
 0xc1f   :  { %1907 = vmatprep.subr.mxu1 %v2010_v2 }
 0xc20   :  { %1908 = vmatpush3.msra.mxu1 %v2140_v15 }
 0xc21   :  { %1923 = vmatprep.subr.mxu1 %v2010_v2 }
 0xcd9   :  { %v759_v58 = vpop.f32.mrf.mxu1 }
 0xcda   :  { %v764_v59 = vrot.slane %v759_v58, 4 }
 0xcdb   :  { %v1889_v60 = vpop.f32.mrf.mxu1 }
 0xcdc   :  { %v766_v61 = vadd.f32 %v764_v59, %v2184_v32 }
 0xcde   :  { %1977 = vtanh.f32 %v766_v61  ;;  %v1756_v63 = vmul.f32 -1.442695, %v766_v61 }
 0xce0   :  { %1979 = vpow2.f32 %v1756_v63 }
 0xceb   :  { %v1978_v62 = vpop.eup %1977 }
 0xcec   :  { %779 = vrot.lane.b32.xlu0 %v1978_v62, %s2013_s4 }
 0xced   :  { %v1980_v0 = vpop.eup %1979 }
 0xcee   :  { %v770_v1 = vadd.f32 1.0, %v1980_v0 }
 0xcf0   :  { %1981 = vrcp.f32 %v770_v1 }
 0xcfd   :  { %v1982_v3 = vpop.eup %1981 }
 0xcfe   :  { %v777_v10 = vmul.f32 %v1982_v3, %v775_v7 }
 0xd5e   :  { %v780_v4 = vpop.permute.xlu0 %779 }
 0xd5f   :  { %v782_v6 = vmul.f32 %v1982_v3, %v780_v4 }
 0xd61   :  { %784 = vrot.lane.b32.xlu1 %v782_v6, %s2012_s22 }
 0xdd3   :  { %v785_v11 = vpop.permute.xlu1 %784 }
 0xdd4   :  { %v787_v16 = vadd.f32 %v785_v11, %v777_v10 }
 0xdd6   :  { %1983 = vtanh.f32 %v787_v16 }
 0xde3   :  { %v1984_v32 = vpop.eup %1983 }
 0xde4   :  { %790 = vrot.lane.b32.xlu0 %v1984_v32, %s2013_s4 }
 0xe56   :  { %v791_v17 = vpop.permute.xlu0 %790 }
 0xe57   :  { %v2263_v18 = vmul.f32 %v1982_v3, %v791_v17 }
 0xe59   :  { %v800_v19 = vrot.slane %v2263_v18, 4 }
 0xe5b   :  { %801 = vrot.lane.b32.xlu1 %v800_v19, %s2012_s22 }
 0xecd   :  { %v802_v20 = vpop.permute.xlu1 %801 }
 0xece   :  { %1899 = vmatmul.mubr.msk.f32.vlgmr.msra.gmra.mxu0 %vm233_vm4, %v802_v20 }
 0xecf   :  { %1913 = vmatpush3.msra.mxu0 %v2120_v12  ;;  %1920 = vmatprep.mubr.msk.f32.mxu0 %vm2011_vm0, %v2010_v2 }
 0xed0   :  { %1914 = vmatprep.subr.mxu0 %v2010_v2 }
 0xed1   :  { %1915 = vmatpush3.msra.mxu0 %v2127_v13 }
 0xed2   :  { %1916 = vmatprep.subr.mxu0 %v2010_v2 }
 0xed3   :  { %1917 = vmatpush3.msra.mxu0 %v2133_v14 }
 0xed4   :  { %1918 = vmatprep.subr.mxu0 %v2010_v2 }
 0xed5   :  { %1919 = vmatpush3.msra.mxu0 %v2140_v15  ;;  %v887_v15 = vrot.slane %v787_v16, 7 }
 0xed6   :  { %1930 = vmatprep.subr.mxu0 %v2010_v2 }
 0xf8e   :  { %v871_v21 = vpop.f32.mrf.mxu0 }
 0xf8f   :  { %v876_v22 = vrot.slane %v871_v21, 3 }
 0xf90   :  { %v1900_v12 = vpop.f32.mrf.mxu0 }
 0xf91   :  { %v878_v23 = vadd.f32 %v876_v22, %v2178_v29  ;;  %v1137_v22 = vld [vmem:[%s2558_s7] sm:$0xff] }
 0xf93   :  { %1985 = vtanh.f32 %v878_v23  ;;  %v1758_v13 = vmul.f32 -1.442695, %v878_v23 }
 0xf95   :  { %1987 = vpow2.f32 %v1758_v13 }
 0xfa0   :  { %v1986_v24 = vpop.eup %1985 }
 0xfa1   :  { %891 = vrot.lane.b32.xlu0 %v1986_v24, %s2013_s4 }
 0xfa2   :  { %v1988_v25 = vpop.eup %1987 }
 0xfa3   :  { %v882_v26 = vadd.f32 1.0, %v1988_v25 }
 0xfa5   :  { %1989 = vrcp.f32 %v882_v26 }
 0xfb2   :  { %v1990_v14 = vpop.eup %1989 }
 0xfb3   :  { %v889_v33 = vmul.f32 %v1990_v14, %v887_v15  ;;  %v2326_v15 = vshrl.u32 %v42_v8, 7 }
 0xfb5   :  { %vm1299_vm14 = vcmp.eq.s32.totalorder %v2326_v15, 3 }
0x1013   :  { %v892_v27 = vpop.permute.xlu0 %891 }
0x1014   :  { %v894_v28 = vmul.f32 %v1990_v14, %v892_v27 }
0x1016   :  { %896 = vrot.lane.b32.xlu1 %v894_v28, %s2012_s22 }
0x1088   :  { %v897_v34 = vpop.permute.xlu1 %896 }
0x1089   :  { %v899_v36 = vadd.f32 %v897_v34, %v889_v33  ;;  %v2332_v33 = vld [vmem:[%s2560_s10] sm:$0x1f]  ;;  %v2015_v34 = vmov -10000.0  }
0x108b   :  { %1991 = vtanh.f32 %v899_v36  ;;  %v999_v52 = vrot.slane %v899_v36, 7  ;;  %v1300_v36 = vsel %vm1299_vm14, 0.0, %v2015_v34 }
0x1098   :  { %v1992_v29 = vpop.eup %1991 }
0x1099   :  { %902 = vrot.lane.b32.xlu0 %v1992_v29, %s2013_s4  ;;  %v2335_v29 = vadd.f32 %v1300_v36, %v2332_v33 }
0x110b   :  { %v903_v37 = vpop.permute.xlu0 %902 }
0x110c   :  { %v905_v38 = vmul.f32 %v1990_v14, %v903_v37  ;;  %v1303_v37 = vsel %vm1302_vm15, %v2335_v29, -inf }
0x110e   :  { %v912_v39 = vrot.slane %v905_v38, 5 }
0x1110   :  { %913 = vrot.lane.b32.xlu1 %v912_v39, %s2012_s22 }
0x1182   :  { %v914_v40 = vpop.permute.xlu1 %913 }
0x1183   :  { %1910 = vmatmul.mubr.msk.f32.vlgmr.msra.gmra.mxu1 %vm233_vm4, %v914_v40 }
0x1184   :  { %1927 = vmatprep.mubr.msk.f32.mxu1 %vm2011_vm0, %v2010_v2 }
0x1243   :  { %v983_v41 = vpop.f32.mrf.mxu1 }
0x1244   :  { %v988_v42 = vrot.slane %v983_v41, 2 }
0x1245   :  { %v1911_v43 = vpop.f32.mrf.mxu1 }
0x1246   :  { %v990_v44 = vadd.f32 %v988_v42, %v2180_v30  ;;  %v1763_v42 = vld [vmem:[%s2561_s9] ss:$0 sm:$0xff] }
0x1248   :  { %1993 = vtanh.f32 %v990_v44  ;;  %v1760_v46 = vmul.f32 -1.442695, %v990_v44 }
0x124a   :  { %1995 = vpow2.f32 %v1760_v46 }
0x1255   :  { %v1994_v45 = vpop.eup %1993 }
0x1256   :  { %1003 = vrot.lane.b32.xlu0 %v1994_v45, %s2013_s4 }
0x1257   :  { %v1996_v47 = vpop.eup %1995 }
0x1258   :  { %v994_v48 = vadd.f32 1.0, %v1996_v47 }
0x125a   :  { %1997 = vrcp.f32 %v994_v48  ;;  %v1329_v48 = vsub.s32 0, %v2326_v15 }
0x1267   :  { %v1998_v49 = vpop.eup %1997 }
0x1268   :  { %v1001_v53 = vmul.f32 %v1998_v49, %v999_v52 }
0x12c8   :  { %v1004_v50 = vpop.permute.xlu0 %1003 }
0x12c9   :  { %v1006_v51 = vmul.f32 %v1998_v49, %v1004_v50 }
0x12cb   :  { %1008 = vrot.lane.b32.xlu1 %v1006_v51, %s2012_s22 }
0x133d   :  { %v1009_v54 = vpop.permute.xlu1 %1008 }
0x133e   :  { %v1011_v56 = vadd.f32 %v1009_v54, %v1001_v53 }
0x1340   :  { %1999 = vtanh.f32 %v1011_v56 }
0x134d   :  { %v2000_v30 = vpop.eup %1999 }
0x134e   :  { %1014 = vrot.lane.b32.xlu0 %v2000_v30, %s2013_s4 }
0x13c0   :  { %v1015_v57 = vpop.permute.xlu0 %1014 }
0x13c1   :  { %v1017_v58 = vmul.f32 %v1998_v49, %v1015_v57 }
0x13c3   :  { %v1024_v59 = vrot.slane %v1017_v58, 6 }
0x13c5   :  { %1025 = vrot.lane.b32.xlu1 %v1024_v59, %s2012_s22 }
0x1437   :  { %v1026_v60 = vpop.permute.xlu1 %1025 }
0x1438   :  { %1921 = vmatmul.mubr.msk.f32.vlgmr.msra.gmra.mxu0 %vm233_vm4, %v1026_v60 }
0x1439   :  { %1934 = vmatprep.mubr.msk.f32.mxu0 %vm2011_vm0, %v2010_v2  ;;  %vm2356_vm0 = vcmp.eq.s32.totalorder %v2326_v15, %v2111_v9 }
0x14f8   :  { %v1095_v61 = vpop.f32.mrf.mxu0 }
0x14f9   :  { %v1100_v62 = vrot.slane %v1095_v61, 1 }
0x14fa   :  { %v1922_v63 = vpop.f32.mrf.mxu0 }
0x14fb   :  { %v1102_v0 = vadd.f32 %v1100_v62, %v2182_v31  ;;  %v1111_v31 = vrot.slane %v1011_v56, 7 }
0x14fd   :  { %2001 = vtanh.f32 %v1102_v0  ;;  %v1762_v3 = vmul.f32 -1.442695, %v1102_v0 }
0x14ff   :  { %2003 = vpow2.f32 %v1762_v3  ;;  %v1361_v3 = vsub.s32 1, %v2326_v15 }
0x150a   :  { %v2002_v1 = vpop.eup %2001 }
0x150b   :  { %1115 = vrot.lane.b32.xlu0 %v2002_v1, %s2013_s4 }
0x150c   :  { %v2004_v4 = vpop.eup %2003 }
0x150d   :  { %v1106_v6 = vadd.f32 1.0, %v2004_v4 }
0x150f   :  { %2005 = vrcp.f32 %v1106_v6 }
0x151c   :  { %v2006_v7 = vpop.eup %2005 }
0x151d   :  { %v1113_v16 = vmul.f32 %v2006_v7, %v1111_v31 }
0x157d   :  { %v1116_v10 = vpop.permute.xlu0 %1115 }
0x157e   :  { %v1118_v11 = vmul.f32 %v2006_v7, %v1116_v10 }
0x1580   :  { %1120 = vrot.lane.b32.xlu1 %v1118_v11, %s2012_s22 }
0x1584   :  { %453 = vrot.lane.b32.xlu1 %v2206_v5, %s2012_s22 }
0x1588   :  { %683 = vrot.lane.b32.xlu1 %v2244_v55, %s2012_s22  ;;  %v1138_v55 = vld [vmem:[%s2558_s7 + $0x8] sm:$0xff]  ;;  %s2014_s7 = smov 112  }
0x1589   :  { %1924 = vmatpush3.msra.mxu1 %v1138_v55 }
0x158a   :  { %1925 = vmatprep.subr.mxu1 %v2010_v2 }
0x158b   :  { %1926 = vmatpush3.msra.mxu1 %v1137_v22 }
0x158c   :  { %907 = vrot.lane.b32.xlu1 %v905_v38, %s2012_s22  ;;  %v1304_v38 = vrot.slane %v1303_v37, 4 }
0x158e   :  { %v1305_v39 = vmax.f32 %v1303_v37, %v1304_v38 }
0x1590   :  { %v1306_v8 = vrot.slane %v1305_v39, 2 }
0x1592   :  { %v1307_v40 = vmax.f32 %v1305_v39, %v1306_v8  ;;  %v1425_v39 = vsub.s32 3, %v2326_v15 }
0x1594   :  { %v1308_v41 = vrot.slane %v1307_v40, 1 }
0x1596   :  { %v2344_v44 = vmax.f32 %v1307_v40, %v1308_v41 }
0x15f2   :  { %v1121_v32 = vpop.permute.xlu1 %1120 }
0x15f3   :  { %v1123_v17 = vadd.f32 %v1121_v32, %v1113_v16 }
0x15f5   :  { %2007 = vtanh.f32 %v1123_v17 }
0x15f6   :  { %v454_v19 = vpop.permute.xlu1 %453 }
0x15f7   :  { %457 = vst.msk [vmem:[#allocation2] sm:$0x2] %vm456_vm7, %v454_v19 }
0x15fa   :  { %v684_v20 = vpop.permute.xlu1 %683 }
0x15fb   :  { %687 = vst.msk [vmem:[#allocation2] sm:$0x8] %vm686_vm8, %v684_v20  ;;  %vm1553_vm8 = vcmask 4096  }
0x15fe   :  { %v908_v21 = vpop.permute.xlu1 %907 }
0x15ff   :  { %911 = vst.msk [vmem:[#allocation2] sm:$0x20] %vm910_vm9, %v908_v21 }
0x1602   :  { %v2008_v5 = vpop.eup %2007 }
0x1603   :  { %1126 = vrot.lane.b32.xlu0 %v2008_v5, %s2013_s4 }
0x1607   :  { %568 = vrot.lane.b32.xlu0 %v2225_v35, %s2012_s22  ;;  %v1220_v35 = vld [vmem:[%s2559_s8 + $0x8] sm:$0xff] }
0x1608   :  { %1931 = vmatpush3.msra.mxu0 %v1220_v35  ;;  %v1393_v35 = vsub.s32 2, %v2326_v15 }
0x1609   :  { %1932 = vmatprep.subr.mxu0 %v2010_v2 }
0x160b   :  { %795 = vrot.lane.b32.xlu0 %v2263_v18, %s2012_s22  ;;  %v1219_v18 = vld [vmem:[%s2559_s8] sm:$0xff] }
0x160c   :  { %1933 = vmatpush3.msra.mxu0 %v1219_v18 }
0x160f   :  { %1019 = vrot.lane.b32.xlu0 %v1017_v58, %s2012_s22 }
0x1675   :  { %v1127_v12 = vpop.permute.xlu0 %1126 }
0x1676   :  { %v1129_v23 = vmul.f32 %v2006_v7, %v1127_v12 }
0x1678   :  { %1131 = vrot.lane.b32.xlu1 %v1129_v23, %s2012_s22 }
0x1679   :  { %v569_v24 = vpop.permute.xlu0 %568 }
0x167a   :  { %572 = vst.msk [vmem:[#allocation2] sm:$0x4] %vm571_vm10, %v569_v24 }
0x167d   :  { %v796_v13 = vpop.permute.xlu0 %795 }
0x167e   :  { %799 = vst.msk [vmem:[#allocation2] sm:$0x10] %vm798_vm11, %v796_v13 }
0x1681   :  { %v1020_v25 = vpop.permute.xlu0 %1019 }
0x1682   :  { %1023 = vst.msk [vmem:[#allocation2] sm:$0x40] %vm1022_vm12, %v1020_v25 }
0x16ea   :  { %v1132_v26 = vpop.permute.xlu1 %1131 }
0x16eb   :  { %1135 = vst.msk [vmem:[#allocation2] sm:$0x80] %vm1134_vm13, %v1132_v26 }
0x16f2   :  { %v1136_v14 = vld [vmem:[#allocation2] sm:$0xff] }
0x16f3   :  { %1221 = vrot.lane.b32.xlu0 %v1136_v14, %s2014_s7  ;;  %1928 = vmatmul.mubr.msk.f32.vlgmr.msra.gmra.mxu1 %vm136_vm3, %v1136_v14 }
0x1765   :  { %v1222_v2 = vpop.permute.xlu0 %1221 }
0x1766   :  { %1935 = vmatmul.mubr.msk.f32.vlgmr.msra.gmra.mxu0 %vm136_vm3, %v1222_v2 }
0x17b3   :  { %v1215_v27 = vpop.f32.mrf.mxu1 }
0x17b4   :  { %v2342_v43 = vadd.f32 %v1763_v42, %v1215_v27 }
0x17b5   :  { %v1929_v28 = vpop.f32.mrf.mxu1 }
0x17b6   :  { %v1322_v47 = vadd.f32 %v2344_v44, %v2342_v43 }
0x1826   :  { %v2346_v45 = vpop.f32.mrf.mxu0 }
0x1827   :  { %v1324_v46 = vrot.slane %v2346_v45, 7  ;;  %v1356_v0 = vrot.slane %v2346_v45, 5  ;;  %v1388_v55 = vrot.slane %v2346_v45, 3  ;;  %v1420_v37 = vrot.slane %v2346_v45, 1 }
0x1828   :  { %v1936_v49 = vpop.f32.mrf.mxu0 }
0x1829   :  { %v1326_v50 = vadd.f32 %v1324_v46, %v1322_v47 }
0x182b   :  { %v1330_v52 = vrot.slane %v1326_v50, %v1329_v48 }
0x182d   :  { %v1331_v53 = vsel %vm2356_vm0, %v1330_v52, 0.0 }
0x182e   :  { %v1332_v54 = vsel %vm1302_vm15, %v1331_v53, 0.0 }
0x182f   :  { %1333 = vadd.xlane.f32.xlu1 %v1332_v54 }
0x18b8   :  { %v1334_v56 = vpop.xlane.xlu1 %1333 }
0x18b9   :  { %v2364_v30 = vadd.f32 %v1334_v56, %v2332_v33 }
0x18bb   :  { %v1336_v57 = vsel %vm1302_vm15, %v2364_v30, -inf }
0x18bc   :  { %v1337_v58 = vrot.slane %v1336_v57, 4 }
0x18be   :  { %v1338_v59 = vmax.f32 %v1336_v57, %v1337_v58 }
0x18c0   :  { %v1339_v60 = vrot.slane %v1338_v59, 2 }
0x18c2   :  { %v1340_v61 = vmax.f32 %v1338_v59, %v1339_v60  ;;  %v1455_v59 = vsub.s32 4, %v2326_v15 }
0x18c4   :  { %v1341_v62 = vrot.slane %v1340_v61, 1 }
0x18c6   :  { %v2368_v63 = vmax.f32 %v1340_v61, %v1341_v62 }
0x18c8   :  { %vm1343_vm1 = vcmp.eq.f32.partialorder %v2364_v30, %v2368_v63  ;;  %v1355_v1 = vadd.f32 %v2368_v63, %v2342_v43 }
0x18ca   :  { %v1358_v4 = vadd.f32 %v1356_v0, %v1355_v1 }
0x18cc   :  { %v1362_v6 = vrot.slane %v1358_v4, %v1361_v3 }
0x18ce   :  { %v1363_v7 = vsel %vm2356_vm0, %v1362_v6, 0.0 }
0x18cf   :  { %v1364_v10 = vsel %vm1302_vm15, %v1363_v7, 0.0 }
0x18d0   :  { %1365 = vadd.xlane.f32.xlu0 %v1364_v10 }
0x1959   :  { %v1366_v11 = vpop.xlane.xlu0 %1365 }
0x195a   :  { %v2382_v31 = vadd.f32 %v1366_v11, %v2332_v33 }
0x195c   :  { %v1368_v16 = vsel %vm1302_vm15, %v2382_v31, -inf }
0x195d   :  { %v1369_v32 = vrot.slane %v1368_v16, 4 }
0x195f   :  { %v1370_v17 = vmax.f32 %v1368_v16, %v1369_v32 }
0x1961   :  { %v1371_v19 = vrot.slane %v1370_v17, 2 }
0x1963   :  { %v1372_v20 = vmax.f32 %v1370_v17, %v1371_v19  ;;  %v1485_v19 = vsub.s32 5, %v2326_v15 }
0x1965   :  { %v1373_v21 = vrot.slane %v1372_v20, 1 }
0x1967   :  { %v2386_v5 = vmax.f32 %v1372_v20, %v1373_v21 }
0x1969   :  { %vm1375_vm2 = vcmp.eq.f32.partialorder %v2382_v31, %v2386_v5  ;;  %v1387_v22 = vadd.f32 %v2386_v5, %v2342_v43 }
0x196b   :  { %v1390_v18 = vadd.f32 %v1388_v55, %v1387_v22 }
0x196d   :  { %v1394_v12 = vrot.slane %v1390_v18, %v1393_v35 }
0x196f   :  { %v1395_v23 = vsel %vm2356_vm0, %v1394_v12, 0.0 }
0x1970   :  { %v1396_v24 = vsel %vm1302_vm15, %v1395_v23, 0.0 }
0x1971   :  { %1397 = vadd.xlane.f32.xlu0 %v1396_v24 }
0x19fa   :  { %v1398_v13 = vpop.xlane.xlu0 %1397 }
0x19fb   :  { %v2400_v25 = vadd.f32 %v1398_v13, %v2332_v33 }
0x19fd   :  { %v1400_v26 = vsel %vm1302_vm15, %v2400_v25, -inf }
0x19fe   :  { %v1401_v14 = vrot.slane %v1400_v26, 4 }
0x1a00   :  { %v1402_v2 = vmax.f32 %v1400_v26, %v1401_v14 }
0x1a02   :  { %v1403_v27 = vrot.slane %v1402_v2, 2 }
0x1a04   :  { %v1404_v28 = vmax.f32 %v1402_v2, %v1403_v27 }
0x1a06   :  { %v1405_v34 = vrot.slane %v1404_v28, 1 }
0x1a08   :  { %v2404_v36 = vmax.f32 %v1404_v28, %v1405_v34  ;;  %v1515_v28 = vsub.s32 6, %v2326_v15 }
0x1a0a   :  { %vm1407_vm3 = vcmp.eq.f32.partialorder %v2400_v25, %v2404_v36  ;;  %v1419_v38 = vadd.f32 %v2404_v36, %v2342_v43 }
0x1a0c   :  { %v1422_v8 = vadd.f32 %v1420_v37, %v1419_v38 }
0x1a0e   :  { %v1426_v40 = vrot.slane %v1422_v8, %v1425_v39 }
0x1a10   :  { %v1427_v41 = vsel %vm2356_vm0, %v1426_v40, 0.0 }
0x1a11   :  { %v1428_v42 = vsel %vm1302_vm15, %v1427_v41, 0.0 }
0x1a12   :  { %1429 = vadd.xlane.f32.xlu1 %v1428_v42 }
0x1a9b   :  { %v1430_v47 = vpop.xlane.xlu1 %1429 }
0x1a9c   :  { %v2418_v48 = vadd.f32 %v1430_v47, %v2332_v33 }
0x1a9e   :  { %v1432_v49 = vsel %vm1302_vm15, %v2418_v48, -inf }
0x1a9f   :  { %v1433_v50 = vrot.slane %v1432_v49, 4 }
0x1aa1   :  { %v1434_v52 = vmax.f32 %v1432_v49, %v1433_v50 }
0x1aa3   :  { %v1435_v53 = vrot.slane %v1434_v52, 2 }
0x1aa5   :  { %v1436_v54 = vmax.f32 %v1434_v52, %v1435_v53 }
0x1aa7   :  { %v1437_v56 = vrot.slane %v1436_v54, 1 }
0x1aa9   :  { %v2422_v57 = vmax.f32 %v1436_v54, %v1437_v56  ;;  %v1545_v56 = vsub.s32 7, %v2326_v15 }
0x1aab   :  { %vm1439_vm4 = vcmp.eq.f32.partialorder %v2418_v48, %v2422_v57  ;;  %v1451_v58 = vadd.f32 %v2422_v57, %v2342_v43 }
0x1aad   :  { %v1452_v60 = vadd.f32 %v1451_v58, %v1324_v46 }
0x1aaf   :  { %v1456_v61 = vrot.slane %v1452_v60, %v1455_v59 }
0x1ab1   :  { %v1457_v62 = vsel %vm2356_vm0, %v1456_v61, 0.0  ;;  %v1551_v61 = vld [vmem:[%s2562_s11] sm:$0x1f] }
0x1ab2   :  { %v1458_v1 = vsel %vm1302_vm15, %v1457_v62, 0.0 }
0x1ab3   :  { %1459 = vadd.xlane.f32.xlu0 %v1458_v1 }
0x1b3c   :  { %v1460_v3 = vpop.xlane.xlu0 %1459 }
0x1b3d   :  { %v2435_v4 = vadd.f32 %v1460_v3, %v2332_v33 }
0x1b3f   :  { %v1462_v6 = vsel %vm1302_vm15, %v2435_v4, -inf }
0x1b40   :  { %v1463_v7 = vrot.slane %v1462_v6, 4 }
0x1b42   :  { %v1464_v10 = vmax.f32 %v1462_v6, %v1463_v7 }
0x1b44   :  { %v1465_v11 = vrot.slane %v1464_v10, 2 }
0x1b46   :  { %v1466_v16 = vmax.f32 %v1464_v10, %v1465_v11 }
0x1b48   :  { %v1467_v32 = vrot.slane %v1466_v16, 1 }
0x1b4a   :  { %v2439_v46 = vmax.f32 %v1466_v16, %v1467_v32 }
0x1b4c   :  { %vm1469_vm5 = vcmp.eq.f32.partialorder %v2435_v4, %v2439_v46  ;;  %v1481_v17 = vadd.f32 %v2439_v46, %v2342_v43 }
0x1b4e   :  { %v1482_v20 = vadd.f32 %v1481_v17, %v1356_v0 }
0x1b50   :  { %v1486_v21 = vrot.slane %v1482_v20, %v1485_v19 }
0x1b52   :  { %v1487_v22 = vsel %vm2356_vm0, %v1486_v21, 0.0 }
0x1b53   :  { %v1488_v35 = vsel %vm1302_vm15, %v1487_v22, 0.0 }
0x1b54   :  { %1489 = vadd.xlane.f32.xlu1 %v1488_v35 }
0x1bdd   :  { %v1490_v18 = vpop.xlane.xlu1 %1489 }
0x1bde   :  { %v2452_v12 = vadd.f32 %v1490_v18, %v2332_v33 }
0x1be0   :  { %v1492_v23 = vsel %vm1302_vm15, %v2452_v12, -inf }
0x1be1   :  { %v1493_v24 = vrot.slane %v1492_v23, 4 }
0x1be3   :  { %v1494_v13 = vmax.f32 %v1492_v23, %v1493_v24 }
0x1be5   :  { %v1495_v26 = vrot.slane %v1494_v13, 2 }
0x1be7   :  { %v1496_v14 = vmax.f32 %v1494_v13, %v1495_v26 }
0x1be9   :  { %v1497_v2 = vrot.slane %v1496_v14, 1 }
0x1beb   :  { %v2456_v0 = vmax.f32 %v1496_v14, %v1497_v2 }
0x1bed   :  { %vm1499_vm6 = vcmp.eq.f32.partialorder %v2452_v12, %v2456_v0  ;;  %v1511_v27 = vadd.f32 %v2456_v0, %v2342_v43 }
0x1bef   :  { %v1512_v34 = vadd.f32 %v1511_v27, %v1388_v55 }
0x1bf1   :  { %v1516_v38 = vrot.slane %v1512_v34, %v1515_v28 }
0x1bf3   :  { %v1517_v39 = vsel %vm2356_vm0, %v1516_v38, 0.0 }
0x1bf4   :  { %v1518_v8 = vsel %vm1302_vm15, %v1517_v39, 0.0 }
0x1bf5   :  { %1519 = vadd.xlane.f32.xlu0 %v1518_v8 }
0x1c7e   :  { %v1520_v40 = vpop.xlane.xlu0 %1519 }
0x1c7f   :  { %v1521_v41 = vadd.f32 %v1520_v40, %v2332_v33 }
0x1c81   :  { %v1522_v42 = vsel %vm1302_vm15, %v1521_v41, -inf }
0x1c82   :  { %v1523_v47 = vrot.slane %v1522_v42, 4 }
0x1c84   :  { %v1524_v49 = vmax.f32 %v1522_v42, %v1523_v47  ;;  %v1500_v42 = vsel %vm1499_vm6, %v2326_v15, 5 }
0x1c85   :  { %v1501_v47 = vsel %vm1302_vm15, %v1500_v42, 2147483647 }
0x1c86   :  { %v1525_v50 = vrot.slane %v1524_v49, 2 }
0x1c88   :  { %v1526_v52 = vmax.f32 %v1524_v49, %v1525_v50  ;;  %v1502_v49 = vrot.slane %v1501_v47, 4 }
0x1c8a   :  { %v1527_v53 = vrot.slane %v1526_v52, 1 }
0x1c8c   :  { %v1528_v54 = vmax.f32 %v1526_v52, %v1527_v53 }
0x1c8e   :  { %vm1529_vm7 = vcmp.eq.f32.partialorder %v1521_v41, %v1528_v54  ;;  %v1541_v55 = vadd.f32 %v1528_v54, %v2342_v43 }
0x1c8f   :  { %v1530_v22 = vsel %vm1529_vm7, %v2326_v15, 5 }
0x1c90   :  { %v1542_v58 = vadd.f32 %v1541_v55, %v1420_v37  ;;  %v1531_v35 = vsel %vm1302_vm15, %v1530_v22, 2147483647 }
0x1c91   :  { %v1532_v18 = vrot.slane %v1531_v35, 4 }
0x1c92   :  { %v1546_v59 = vrot.slane %v1542_v58, %v1545_v56 }
0x1c93   :  { %vm1533_vm13 = vcmp.lt.s32.totalorder %v1531_v35, %v1532_v18 }
0x1c94   :  { %v1547_v33 = vsel %vm2356_vm0, %v1546_v59, 0.0  ;;  %v1534_v23 = vsel %vm1533_vm13, %v1531_v35, %v1532_v18 }
0x1c95   :  { %v1548_v60 = vsel %vm1302_vm15, %v1547_v33, 0.0  ;;  %v1535_v24 = vrot.slane %v1534_v23, 2 }
0x1c96   :  { %1549 = vadd.xlane.f32.xlu1 %v1548_v60 }
0x1c97   :  { %vm1536_vm14 = vcmp.lt.s32.totalorder %v1534_v23, %v1535_v24 }
0x1c98   :  { %v1537_v13 = vsel %vm1536_vm14, %v1534_v23, %v1535_v24 }
0x1c99   :  { %v1538_v26 = vrot.slane %v1537_v13, 1 }
0x1c9b   :  { %vm1539_vm0 = vcmp.lt.s32.totalorder %v1537_v13, %v1538_v26 }
0x1c9c   :  { %v1540_v2 = vsel %vm1539_vm0, %v1537_v13, %v1538_v26 }
0x1d1f   :  { %v1550_v62 = vpop.xlane.xlu1 %1549 }
0x1d20   :  { %v1552_v1 = vadd.f32 %v1551_v61, %v1550_v62 }
0x1d22   :  { %v1554_v43 = vsel %vm1553_vm8, %v1552_v1, -inf }
0x1d23   :  { %v1555_v3 = vrot.slane %v1554_v43, 4 }
0x1d25   :  { %v1556_v6 = vmax.f32 %v1554_v43, %v1555_v3 }
0x1d27   :  { %v1557_v7 = vrot.slane %v1556_v6, 2 }
0x1d29   :  { %v1558_v45 = vmax.f32 %v1556_v6, %v1557_v7  ;;  %v1470_v7 = vsel %vm1469_vm5, %v2326_v15, 5 }
0x1d2b   :  { %v1559_v37 = vrot.slane %v1558_v45, 1 }
0x1d2d   :  { %v2480_v10 = vmax.f32 %v1558_v45, %v1559_v37  ;;  %v1471_v45 = vsel %vm1302_vm15, %v1470_v7, 2147483647 }
0x1d2e   :  { %v1472_v37 = vrot.slane %v1471_v45, 4 }
0x1d2f   :  { %vm1561_vm9 = vcmp.eq.f32.partialorder %v1552_v1, %v2480_v10 }
0x1d30   :  { %v1562_v51 = vsel %vm1561_vm9, %v2326_v15, 5  ;;  %vm1473_vm14 = vcmp.lt.s32.totalorder %v1471_v45, %v1472_v37 }
0x1d31   :  { %v1563_v11 = vsel %vm1553_vm8, %v1562_v51, 2147483647  ;;  %vm1580_vm8 = vcmask 39936   ;;  %v1474_v51 = vsel %vm1473_vm14, %v1471_v45, %v1472_v37  ;;  %vm1634_vm14 = vcmp.eq.s32.totalorder %v2111_v9, 4 }
0x1d32   :  { %v1564_v16 = vrot.slane %v1563_v11, 4 }
0x1d34   :  { %vm1565_vm10 = vcmp.lt.s32.totalorder %v1563_v11, %v1564_v16 }
0x1d35   :  { %v1566_v32 = vsel %vm1565_vm10, %v1563_v11, %v1564_v16  ;;  %vm1503_vm10 = vcmp.lt.s32.totalorder %v1501_v47, %v1502_v49  ;;  %v1475_v11 = vrot.slane %v1474_v51, 2 }
0x1d36   :  { %v1567_v17 = vrot.slane %v1566_v32, 2  ;;  %v1504_v50 = vsel %vm1503_vm10, %v1501_v47, %v1502_v49  ;;  %vm1615_vm10 = vcmp.eq.s32.totalorder %v2111_v9, 5 }
0x1d37   :  { %v1505_v52 = vrot.slane %v1504_v50, 2  ;;  %vm1476_vm0 = vcmp.lt.s32.totalorder %v1474_v51, %v1475_v11 }
0x1d38   :  { %vm1568_vm11 = vcmp.lt.s32.totalorder %v1566_v32, %v1567_v17  ;;  %v1477_v16 = vsel %vm1476_vm0, %v1474_v51, %v1475_v11 }
0x1d39   :  { %v1569_v19 = vsel %vm1568_vm11, %v1566_v32, %v1567_v17  ;;  %vm1506_vm11 = vcmp.lt.s32.totalorder %v1504_v50, %v1505_v52  ;;  %v1478_v17 = vrot.slane %v1477_v16, 1 }
0x1d3a   :  { %v1570_v20 = vrot.slane %v1569_v19, 1  ;;  %v1507_v53 = vsel %vm1506_vm11, %v1504_v50, %v1505_v52 }
0x1d3b   :  { %v1508_v55 = vrot.slane %v1507_v53, 1  ;;  %vm1479_vm5 = vcmp.lt.s32.totalorder %v1477_v16, %v1478_v17 }
0x1d3c   :  { %vm1571_vm12 = vcmp.lt.s32.totalorder %v1569_v19, %v1570_v20  ;;  %v1480_v18 = vsel %vm1479_vm5, %v1477_v16, %v1478_v17  ;;  %vm1653_vm5 = vcmp.eq.s32.totalorder %v2111_v9, 3 }
0x1d3d   :  { %v1572_v21 = vsel %vm1571_vm12, %v1569_v19, %v1570_v20  ;;  %vm1509_vm12 = vcmp.lt.s32.totalorder %v1507_v53, %v1508_v55 }
0x1d3e   :  { %1575 = vperm.xlu0 %1944, %v1572_v21   ;;  %v1510_v60 = vsel %vm1509_vm12, %v1507_v53, %v1508_v55 }
0x1db9   :  { %v1576_v14 = vpop.permute.xlu0 %1575 }
0x1dba   :  { %vm1578_vm9 = vcmp.eq.s32.totalorder %v2111_v9, %v1576_v14 }
0x1dbb   :  { %v1579_v27 = vsel %vm1578_vm9, %v1540_v2, 0  ;;  %vm1573_vm9 = vcmp.eq.s32.totalorder %v2111_v9, 7 }
0x1dbc   :  { %v1581_v28 = vsel %vm1580_vm8, %v1579_v27, 2147483648  ;;  %v1577_v4 = vsel %vm1573_vm9, %v1576_v14, 0  ;;  %v1440_v14 = vsel %vm1439_vm4, %v2326_v15, 5 }
0x1dbd   :  { %v1583_v34 = vshra.s32 %v1581_v28, 16  ;;  %v1582_v39 = vand.u32 65535, %v1581_v28 }
0x1dbf   :  { %v1585_v38 = vcvt.s32.f32 %v1583_v34  ;;  %v1584_v40 = vcvt.s32.f32 %v1582_v39 }
0x1dc1   :  { %1586 = vmax.xlane.f32.xlu1 %v1585_v38 }
0x1e4a   :  { %v1587_v8 = vpop.xlane.xlu1 %1586 }
0x1e4b   :  { %vm1588_vm7 = vcmp.eq.f32.partialorder %v1585_v38, %v1587_v8  ;;  %v1593_v54 = vcvt.f32.s32 %v1587_v8  ;;  %v1441_v38 = vsel %vm1302_vm15, %v1440_v14, 2147483647 }
0x1e4c   :  { %v1589_v41 = vsel %vm1588_vm7, %v1584_v40, -inf  ;;  %vm1596_vm7 = vcmp.eq.s32.totalorder %v2111_v9, 6  ;;  %v1442_v39 = vrot.slane %v1441_v38, 4 }
0x1e4d   :  { %1590 = vmax.xlane.f32.xlu1 %v1589_v41  ;;  %v1594_v58 = vshll.u32 %v1593_v54, 16 }
0x1ed6   :  { %v1591_v56 = vpop.xlane.xlu1 %1590 }
0x1ed7   :  { %v1592_v59 = vcvt.f32.s32 %v1591_v56 }
0x1ed9   :  { %v1595_v33 = vadd.s32 %v1594_v58, %v1592_v59 }
0x1edb   :  { %vm1598_vm13 = vcmp.eq.s32.totalorder %v2111_v9, %v1595_v33  ;;  %v1597_v22 = vsel %vm1596_vm7, %v1595_v33, %v1577_v4 }
0x1edc   :  { %v1599_v12 = vsel %vm1598_vm13, %v1510_v60, 0  ;;  %vm1443_vm13 = vcmp.lt.s32.totalorder %v1441_v38, %v1442_v39 }
0x1edd   :  { %v1600_v0 = vsel %vm1580_vm8, %v1599_v12, 2147483648  ;;  %v1444_v8 = vsel %vm1443_vm13, %v1441_v38, %v1442_v39 }
0x1ede   :  { %v1602_v61 = vshra.s32 %v1600_v0, 16  ;;  %v1601_v1 = vand.u32 65535, %v1600_v0  ;;  %v1445_v40 = vrot.slane %v1444_v8, 2  ;;  %v1408_v0 = vsel %vm1407_vm3, %v2326_v15, 5 }
0x1ee0   :  { %v1604_v62 = vcvt.s32.f32 %v1602_v61  ;;  %v1603_v3 = vcvt.s32.f32 %v1601_v1  ;;  %v1409_v61 = vsel %vm1302_vm15, %v1408_v0, 2147483647 }
0x1ee2   :  { %1605 = vmax.xlane.f32.xlu1 %v1604_v62 }
0x1f6b   :  { %v1606_v43 = vpop.xlane.xlu1 %1605 }
0x1f6c   :  { %vm1607_vm6 = vcmp.eq.f32.partialorder %v1604_v62, %v1606_v43  ;;  %v1612_v32 = vcvt.f32.s32 %v1606_v43  ;;  %v1410_v62 = vrot.slane %v1409_v61, 4 }
0x1f6d   :  { %v1608_v6 = vsel %vm1607_vm6, %v1603_v3, -inf  ;;  %vm1446_vm6 = vcmp.lt.s32.totalorder %v1444_v8, %v1445_v40 }
0x1f6e   :  { %1609 = vmax.xlane.f32.xlu1 %v1608_v6  ;;  %v1613_v20 = vshll.u32 %v1612_v32, 16  ;;  %v1447_v41 = vsel %vm1446_vm6, %v1444_v8, %v1445_v40  ;;  %vm1411_vm7 = vcmp.lt.s32.totalorder %v1409_v61, %v1410_v62 }
0x1f6f   :  { %v1448_v47 = vrot.slane %v1447_v41, 1  ;;  %v1412_v1 = vsel %vm1411_vm7, %v1409_v61, %v1410_v62 }
0x1f70   :  { %v1413_v43 = vrot.slane %v1412_v1, 2 }
0x1f71   :  { %vm1449_vm0 = vcmp.lt.s32.totalorder %v1447_v41, %v1448_v47 }
0x1f72   :  { %v1450_v48 = vsel %vm1449_vm0, %v1447_v41, %v1448_v47 }
0x1ff7   :  { %v1610_v19 = vpop.xlane.xlu1 %1609 }
0x1ff8   :  { %v1611_v21 = vcvt.f32.s32 %v1610_v19 }
0x1ffa   :  { %v1614_v46 = vadd.s32 %v1613_v20, %v1611_v21 }
0x1ffc   :  { %v1616_v35 = vsel %vm1615_vm10, %v1614_v46, %v1597_v22  ;;  %vm1617_vm11 = vcmp.eq.s32.totalorder %v2111_v9, %v1614_v46  ;;  %vm1414_vm10 = vcmp.lt.s32.totalorder %v1412_v1, %v1413_v43  ;;  %v1376_v22 = vsel %vm1375_vm2, %v2326_v15, 5 }
0x1ffd   :  { %v1618_v23 = vsel %vm1617_vm11, %v1480_v18, 0  ;;  %v1415_v3 = vsel %vm1414_vm10, %v1412_v1, %v1413_v43  ;;  %vm1691_vm10 = vcmp.eq.s32.totalorder %v2111_v9, 1 }
0x1ffe   :  { %v1619_v24 = vsel %vm1580_vm8, %v1618_v23, 2147483648  ;;  %v1416_v7 = vrot.slane %v1415_v3, 1 }
0x1fff   :  { %v1621_v13 = vshra.s32 %v1619_v24, 16  ;;  %v1620_v2 = vand.u32 65535, %v1619_v24 }
0x2000   :  { %vm1417_vm11 = vcmp.lt.s32.totalorder %v1415_v3, %v1416_v7 }
0x2001   :  { %v1623_v26 = vcvt.s32.f32 %v1621_v13  ;;  %v1622_v28 = vcvt.s32.f32 %v1620_v2  ;;  %v1418_v25 = vsel %vm1417_vm11, %v1415_v3, %v1416_v7 }
0x2003   :  { %1624 = vmax.xlane.f32.xlu1 %v1623_v26 }
0x208c   :  { %v1625_v27 = vpop.xlane.xlu1 %1624 }
0x208d   :  { %vm1626_vm12 = vcmp.eq.f32.partialorder %v1623_v26, %v1625_v27  ;;  %v1631_v42 = vcvt.f32.s32 %v1625_v27 }
0x208e   :  { %v1627_v34 = vsel %vm1626_vm12, %v1622_v28, -inf }
0x208f   :  { %1628 = vmax.xlane.f32.xlu1 %v1627_v34  ;;  %v1632_v50 = vshll.u32 %v1631_v42, 16 }
0x2118   :  { %v1629_v49 = vpop.xlane.xlu1 %1628 }
0x2119   :  { %v1630_v52 = vcvt.f32.s32 %v1629_v49 }
0x211b   :  { %v1633_v53 = vadd.s32 %v1632_v50, %v1630_v52  ;;  %v1344_v50 = vsel %vm1343_vm1, %v2326_v15, 5 }
0x211c   :  { %v1345_v52 = vsel %vm1302_vm15, %v1344_v50, 2147483647 }
0x211d   :  { %v1635_v54 = vsel %vm1634_vm14, %v1633_v53, %v1616_v35  ;;  %vm1636_vm4 = vcmp.eq.s32.totalorder %v2111_v9, %v1633_v53  ;;  %v1377_v35 = vsel %vm1302_vm15, %v1376_v22, 2147483647  ;;  %vm1672_vm14 = vcmp.eq.s32.totalorder %v2111_v9, 2 }
0x211e   :  { %v1637_v57 = vsel %vm1636_vm4, %v1450_v48, 0  ;;  %v1378_v18 = vrot.slane %v1377_v35, 4  ;;  %v1346_v53 = vrot.slane %v1345_v52, 4 }
0x211f   :  { %v1638_v55 = vsel %vm1580_vm8, %v1637_v57, 2147483648 }
0x2120   :  { %v1640_v56 = vshra.s32 %v1638_v55, 16  ;;  %v1639_v59 = vand.u32 65535, %v1638_v55  ;;  %vm1379_vm13 = vcmp.lt.s32.totalorder %v1377_v35, %v1378_v18 }
0x2121   :  { %v1380_v23 = vsel %vm1379_vm13, %v1377_v35, %v1378_v18 }
0x2122   :  { %v1642_v58 = vcvt.s32.f32 %v1640_v56  ;;  %v1641_v60 = vcvt.s32.f32 %v1639_v59  ;;  %v1381_v24 = vrot.slane %v1380_v23, 2 }
0x2124   :  { %1643 = vmax.xlane.f32.xlu0 %v1642_v58  ;;  %vm1382_vm6 = vcmp.lt.s32.totalorder %v1380_v23, %v1381_v24 }
0x2125   :  { %v1383_v13 = vsel %vm1382_vm6, %v1380_v23, %v1381_v24 }
0x2126   :  { %v1384_v2 = vrot.slane %v1383_v13, 1 }
0x2128   :  { %vm1385_vm0 = vcmp.lt.s32.totalorder %v1383_v13, %v1384_v2 }
0x2129   :  { %v1386_v31 = vsel %vm1385_vm0, %v1383_v13, %v1384_v2 }
0x21ad   :  { %v1644_v33 = vpop.xlane.xlu0 %1643 }
0x21ae   :  { %vm1645_vm9 = vcmp.eq.f32.partialorder %v1642_v58, %v1644_v33  ;;  %v1650_v6 = vcvt.f32.s32 %v1644_v33 }
0x21af   :  { %v1646_v12 = vsel %vm1645_vm9, %v1641_v60, -inf  ;;  %vm1347_vm9 = vcmp.lt.s32.totalorder %v1345_v52, %v1346_v53 }
0x21b0   :  { %1647 = vmax.xlane.f32.xlu1 %v1646_v12  ;;  %v1651_v37 = vshll.u32 %v1650_v6, 16 }
0x2239   :  { %v1648_v45 = vpop.xlane.xlu1 %1647 }
0x223a   :  { %v1649_v51 = vcvt.f32.s32 %v1648_v45 }
0x223c   :  { %v1652_v11 = vadd.s32 %v1651_v37, %v1649_v51 }
0x223e   :  { %v1654_v16 = vsel %vm1653_vm5, %v1652_v11, %v1635_v54  ;;  %vm1655_vm3 = vcmp.eq.s32.totalorder %v2111_v9, %v1652_v11  ;;  %v1348_v54 = vsel %vm1347_vm9, %v1345_v52, %v1346_v53 }
0x223f   :  { %v1656_v36 = vsel %vm1655_vm3, %v1418_v25, 0  ;;  %v1349_v48 = vrot.slane %v1348_v54, 2  ;;  %vm1310_vm3 = vcmp.eq.f32.partialorder %v2335_v29, %v2344_v44 }
0x2240   :  { %v1657_v32 = vsel %vm1580_vm8, %v1656_v36, 2147483648  ;;  %v1311_v7 = vsel %vm1310_vm3, %v2326_v15, 5 }
0x2241   :  { %v1659_v17 = vshra.s32 %v1657_v32, 16  ;;  %v1658_v20 = vand.u32 65535, %v1657_v32  ;;  %vm1350_vm7 = vcmp.lt.s32.totalorder %v1348_v54, %v1349_v48  ;;  %v1312_v45 = vsel %vm1302_vm15, %v1311_v7, 2147483647 }
0x2242   :  { %v1351_v57 = vsel %vm1350_vm7, %v1348_v54, %v1349_v48  ;;  %v1313_v37 = vrot.slane %v1312_v45, 4 }
0x2243   :  { %v1661_v19 = vcvt.s32.f32 %v1659_v17  ;;  %v1660_v4 = vcvt.s32.f32 %v1658_v20  ;;  %v1352_v56 = vrot.slane %v1351_v57, 1 }
0x2245   :  { %1662 = vmax.xlane.f32.xlu1 %v1661_v19  ;;  %vm1353_vm5 = vcmp.lt.s32.totalorder %v1351_v57, %v1352_v56 }
0x2246   :  { %v1354_v30 = vsel %vm1353_vm5, %v1351_v57, %v1352_v56 }
0x22ce   :  { %v1663_v21 = vpop.xlane.xlu1 %1662 }
0x22cf   :  { %vm1664_vm12 = vcmp.eq.f32.partialorder %v1661_v19, %v1663_v21  ;;  %v1669_v26 = vcvt.f32.s32 %v1663_v21 }
0x22d0   :  { %v1665_v46 = vsel %vm1664_vm12, %v1660_v4, -inf  ;;  %vm1314_vm12 = vcmp.lt.s32.totalorder %v1312_v45, %v1313_v37 }
0x22d1   :  { %1666 = vmax.xlane.f32.xlu1 %v1665_v46  ;;  %v1670_v28 = vshll.u32 %v1669_v26, 16  ;;  %v1315_v51 = vsel %vm1314_vm12, %v1312_v45, %v1313_v37 }
0x22d2   :  { %v1316_v11 = vrot.slane %v1315_v51, 2 }
0x22d4   :  { %vm1317_vm13 = vcmp.lt.s32.totalorder %v1315_v51, %v1316_v11 }
0x235a   :  { %v1667_v27 = vpop.xlane.xlu1 %1666 }
0x235b   :  { %v1668_v34 = vcvt.f32.s32 %v1667_v27 }
0x235d   :  { %v1671_v14 = vadd.s32 %v1670_v28, %v1668_v34 }
0x235f   :  { %v1673_v38 = vsel %vm1672_vm14, %v1671_v14, %v1654_v16  ;;  %vm1674_vm2 = vcmp.eq.s32.totalorder %v2111_v9, %v1671_v14  ;;  %v1318_v16 = vsel %vm1317_vm13, %v1315_v51, %v1316_v11  ;;  %vm1710_vm14 = vcmp.eq.s32.totalorder %v2111_v9, 0 }
0x2360   :  { %v1675_v5 = vsel %vm1674_vm2, %v1386_v31, 0  ;;  %v1319_v25 = vrot.slane %v1318_v16, 1  ;;  %vm1729_vm2 = vcmp.eq.s32.totalorder %v2111_v9, 8 }
0x2361   :  { %v1676_v39 = vsel %vm1580_vm8, %v1675_v5, 2147483648 }
0x2362   :  { %v1678_v8 = vshra.s32 %v1676_v39, 16  ;;  %v1677_v41 = vand.u32 65535, %v1676_v39  ;;  %vm1320_vm6 = vcmp.lt.s32.totalorder %v1318_v16, %v1319_v25 }
0x2363   :  { %v1321_v29 = vsel %vm1320_vm6, %v1318_v16, %v1319_v25 }
0x2364   :  { %v1680_v40 = vcvt.s32.f32 %v1678_v8  ;;  %v1679_v47 = vcvt.s32.f32 %v1677_v41 }
0x2366   :  { %1681 = vmax.xlane.f32.xlu1 %v1680_v40 }
0x23ef   :  { %v1682_v42 = vpop.xlane.xlu1 %1681 }
0x23f0   :  { %vm1683_vm4 = vcmp.eq.f32.partialorder %v1680_v40, %v1682_v42  ;;  %v1688_v55 = vcvt.f32.s32 %v1682_v42 }
0x23f1   :  { %v1684_v49 = vsel %vm1683_vm4, %v1679_v47, -inf  ;;  %vm1731_vm4 = vcmp.eq.s32.totalorder %v2111_v9, 9 }
0x23f2   :  { %1685 = vmax.xlane.f32.xlu1 %v1684_v49  ;;  %v1689_v59 = vshll.u32 %v1688_v55, 16 }
0x247b   :  { %v1686_v58 = vpop.xlane.xlu1 %1685 }
0x247c   :  { %v1687_v33 = vcvt.f32.s32 %v1686_v58 }
0x247e   :  { %v1690_v60 = vadd.s32 %v1689_v59, %v1687_v33 }
0x2480   :  { %v1692_v12 = vsel %vm1691_vm10, %v1690_v60, %v1673_v38  ;;  %vm1693_vm1 = vcmp.eq.s32.totalorder %v2111_v9, %v1690_v60 }
0x2481   :  { %v1694_v63 = vsel %vm1693_vm1, %v1354_v30, 0 }
0x2482   :  { %v1695_v0 = vsel %vm1580_vm8, %v1694_v63, 2147483648 }
0x2483   :  { %v1697_v61 = vshra.s32 %v1695_v0, 16  ;;  %v1696_v1 = vand.u32 65535, %v1695_v0 }
0x2485   :  { %v1699_v62 = vcvt.s32.f32 %v1697_v61  ;;  %v1698_v3 = vcvt.s32.f32 %v1696_v1 }
0x2487   :  { %1700 = vmax.xlane.f32.xlu1 %v1699_v62 }
0x2510   :  { %v1701_v43 = vpop.xlane.xlu1 %1700 }
0x2511   :  { %vm1702_vm11 = vcmp.eq.f32.partialorder %v1699_v62, %v1701_v43  ;;  %v1707_v36 = vcvt.f32.s32 %v1701_v43 }
0x2512   :  { %v1703_v6 = vsel %vm1702_vm11, %v1698_v3, -inf }
0x2513   :  { %1704 = vmax.xlane.f32.xlu1 %v1703_v6  ;;  %v1708_v17 = vshll.u32 %v1707_v36, 16 }
0x259c   :  { %v1705_v32 = vpop.xlane.xlu1 %1704 }
0x259d   :  { %v1706_v19 = vcvt.f32.s32 %v1705_v32 }
0x259f   :  { %v1709_v20 = vadd.s32 %v1708_v17, %v1706_v19 }
0x25a1   :  { %v1711_v44 = vsel %vm1710_vm14, %v1709_v20, %v1692_v12  ;;  %vm1712_vm0 = vcmp.eq.s32.totalorder %v2111_v9, %v1709_v20 }
0x25a2   :  { %v1713_v15 = vsel %vm1712_vm0, %v1321_v29, 0 }
0x25a3   :  { %v1714_v21 = vsel %vm1580_vm8, %v1713_v15, 2147483648 }
0x25a4   :  { %v1716_v4 = vshra.s32 %v1714_v21, 16  ;;  %v1715_v22 = vand.u32 65535, %v1714_v21 }
0x25a6   :  { %v1718_v46 = vcvt.s32.f32 %v1716_v4  ;;  %v1717_v18 = vcvt.s32.f32 %v1715_v22 }
0x25a8   :  { %1719 = vmax.xlane.f32.xlu0 %v1718_v46 }
0x25be   :  { %1734 = vperm.xlu0 %1944, %v2480_v10  }
0x2631   :  { %v1720_v35 = vpop.xlane.xlu0 %1719 }
0x2632   :  { %vm1721_vm15 = vcmp.eq.f32.partialorder %v1718_v46, %v1720_v35  ;;  %v1726_v24 = vcvt.f32.s32 %v1720_v35 }
0x2633   :  { %v1722_v23 = vsel %vm1721_vm15, %v1717_v18, -inf }
0x2634   :  { %1723 = vmax.xlane.f32.xlu1 %v1722_v23  ;;  %v1727_v26 = vshll.u32 %v1726_v24, 16 }
0x2639   :  { %v1735_v28 = vpop.permute.xlu0 %1734 }
0x26bd   :  { %v1724_v13 = vpop.xlane.xlu1 %1723 }
0x26be   :  { %v1725_v2 = vcvt.f32.s32 %v1724_v13 }
0x26c0   :  { %v1728_v27 = vadd.s32 %v1727_v26, %v1725_v2 }
0x26c2   :  { %v1730_v34 = vsel %vm1729_vm2, %v1728_v27, %v1711_v44 }
0x26c3   :  { %v1736_v14 = vsel %vm1731_vm4, %v1735_v28, %v1730_v34 }
0x26c4   :  { %1737 = vst [vmem:[%s2563_s12] sm:$0x1] %v1736_v14 }

</bundles_post_ra>
